<compile_context>
chip_gen: v7x
topology: tpu7x:2x2x1
jax: 0.10.0
libtpu: 0.0.40
codegen_flags: <defaults>
</compile_context>

<pallas_src>
import math
from functools import partial, lru_cache

import jax
import jax.numpy as jnp
import numpy as np
from jax.experimental import pallas as pl
from jax.experimental.pallas import tpu as pltpu


# -----------------------------------------------------------------------------
# Pallas kernel: fused (add + RMSNorm) + cross multi-head attention for a tile
# of Bt batch elements.  Grid iterates over batch tiles.
# -----------------------------------------------------------------------------
def _cross_attn_kernel(h_ref, r_ref, c_ref, nw_ref,
                       wq_ref, bq_ref, wkv_ref, bkv_ref, wo_ref, bo_ref,
                       out_ref, res_ref, attn_scratch,
                       *, n_head, head_dim, eps, exact_softmax):
    Bt, Lq, D = h_ref.shape
    Lk = c_ref.shape[1]
    H, Dh = n_head, head_dim

    # ---- fused add + RMSNorm (residual kept & returned in fp32) --------------
    resid = h_ref[...].astype(jnp.float32) + r_ref[...].astype(jnp.float32)
    res_ref[...] = resid.astype(res_ref.dtype)
    var = jnp.mean(resid * resid, axis=-1, keepdims=True)
    normed = resid * jax.lax.rsqrt(var + eps) * nw_ref[...].astype(jnp.float32)

    # ---- projections: fold (Bt, L) into MXU rows; bf16 operands, f32 accum ----
    # (head_dim**-0.5 is already folded into wq / bq)
    xq = normed.reshape(Bt * Lq, D).astype(jnp.bfloat16)
    q = jnp.dot(xq, wq_ref[...], preferred_element_type=jnp.float32) + bq_ref[...]

    xc = c_ref[...].reshape(Bt * Lk, D).astype(jnp.bfloat16)
    kv = jnp.dot(xc, wkv_ref[...], preferred_element_type=jnp.float32) + bkv_ref[...]

    q3 = q.reshape(Bt, Lq, D).astype(jnp.bfloat16)          # heads along lane dim
    kv3 = kv.reshape(Bt, Lk, 2 * D).astype(jnp.bfloat16)    # [K | V] along lane dim

    # ---- attention: heads as a short static loop of Bt-batched contractions --
    # Mosaic's in-kernel dot_general takes a single leading batch dim, so heads
    # stay a python loop, but each iteration is one batch-tiled MXU einsum: no
    # per-(b, h) slicing, no jnp.stack, no per-head output projection.
    for h in range(H):
        c0 = h * Dh
        qh = q3[:, :, c0:c0 + Dh]                            # (Bt, Lq, Dh)
        kh = kv3[:, :, c0:c0 + Dh]                           # (Bt, Lk, Dh)
        vh = kv3[:, :, D + c0:D + c0 + Dh]                   # (Bt, Lk, Dh)

        # K-transpose folded into the contraction (no materialized kh.T)
        s = jnp.einsum('bqd,bkd->bqk', qh, kh,
                       preferred_element_type=jnp.float32)   # (Bt, Lq, Lk) f32
        s = s - jnp.max(s, axis=-1, keepdims=True)
        p = jnp.exp(s)
        denom = jnp.sum(p, axis=-1, keepdims=True)
        if exact_softmax:
            p = p / denom
        else:
            p = p * pl.reciprocal(denom, approx=True)        # EUP slot, frees VALU
        o_h = jnp.einsum('bqk,bkd->bqd', p.astype(jnp.bfloat16), vh,
                         preferred_element_type=jnp.float32) # (Bt, Lq, Dh)
        attn_scratch[:, :, c0:c0 + Dh] = o_h.astype(attn_scratch.dtype)

    # ---- merged output projection: one (Bt*Lq, D) x (D, D) matmul -------------
    o2 = attn_scratch[...].reshape(Bt * Lq, D)               # bf16 slab
    out = jnp.dot(o2, wo_ref[...], preferred_element_type=jnp.float32) + bo_ref[...]
    out_ref[...] = out.reshape(Bt, Lq, D).astype(out_ref.dtype)


# -----------------------------------------------------------------------------
# Per-generation tiling / VMEM helpers
# -----------------------------------------------------------------------------
@lru_cache(maxsize=None)
def _physical_vmem_bytes():
    try:
        return int(pltpu.get_tpu_info().vmem_capacity_bytes)
    except Exception:
        return 64 * 2 ** 20          # conservative (v7x per-TC VMEM)


@lru_cache(maxsize=None)
def _target_rows():
    # v5e's MXU is 128-wide (M=256 is already two clean passes); v6e/v7x have
    # 256-wide MXUs, so a 512-row fold halves per-grid-step overhead.
    try:
        kind = jax.devices()[0].device_kind.lower()
    except Exception:
        return 256
    return 256 if "v5" in kind else 512


def _vmem_budget_bytes():
    # Leave ~1/8 headroom: ~56 MiB on v7x (64 MiB physical), ~112 MiB on v5e/v6e.
    return max(32 * 2 ** 20, (_physical_vmem_bytes() * 7) // 8)


def _estimate_vmem_bytes(bt, lq, lk, d, n_head):
    bf16, f32 = 2, 4
    dh = d // n_head
    weights = 2 * ((d * d + d * 2 * d + d * d) * bf16 + (6 * d + 2) * f32)   # dbl-buffered
    io = 2 * bt * (4 * lq + lk) * d * f32                                    # dbl-buffered blocks
    work = (bt * lq * d * f32                       # resid / normed
            + bt * lq * d * (f32 + bf16)            # q f32 + bf16 copy
            + bt * lk * 2 * d * (f32 + bf16)        # kv f32 + bf16 copy
            + 2 * bt * lq * lk * f32                # per-head scores + probs (live)
            + bt * lq * dh * (f32 + bf16)           # per-head PV out
            + bt * lq * d * (bf16 + f32))           # attn scratch slab + projected out
    return weights + io + work


def _vmem_limit_bytes(bt, lq, lk, d, n_head):
    est = _estimate_vmem_bytes(bt, lq, lk, d, n_head)
    return int(min(_vmem_budget_bytes(), max(32 * 2 ** 20, 2 * est)))


def _pick_batch_tile(B, Lq, Lk, D, n_head):
    """Largest divisor of B whose folded row count Bt*Lq stays under the per-chip
    row target and VMEM budget, while keeping >= 2 grid steps whenever B >= 2 so
    both v7x TensorCores get work (harmless on single-TC v5e/v6e)."""
    target_rows = _target_rows()
    budget = _vmem_budget_bytes()
    best = 1
    for bt in range(1, B + 1):
        if B % bt:
            continue
        if bt > 1 and bt * Lq > target_rows:
            continue
        if B >= 2 and B // bt < 2:
            continue
        if bt > 1 and _estimate_vmem_bytes(bt, Lq, Lk, D, n_head) > budget:
            continue
        best = bt
    return best


# -----------------------------------------------------------------------------
# pallas_call builder (cached per shape signature — built once, reused)
# -----------------------------------------------------------------------------
@lru_cache(maxsize=None)
def _build_pallas_call(B, Bt, Lq, Lk, D, n_head, eps, out_dtype, exact_softmax,
                       vmem_limit):
    head_dim = D // n_head

    seq_q = pl.BlockSpec((Bt, Lq, D), lambda b: (b, 0, 0))
    seq_k = pl.BlockSpec((Bt, Lk, D), lambda b: (b, 0, 0))

    def const_spec(shape):
        # grid-invariant weights / biases: constant block index -> fetched once
        return pl.BlockSpec(shape, lambda b: (0, 0))

    kernel = partial(_cross_attn_kernel, n_head=n_head, head_dim=head_dim,
                     eps=eps, exact_softmax=exact_softmax)

    return pl.pallas_call(
        kernel,
        grid=(B // Bt,),
        in_specs=[seq_q, seq_q, seq_k,
                  const_spec((1, D)),            # norm weight
                  const_spec((D, D)),            # Wq (bf16, pre-transposed, pre-scaled)
                  const_spec((1, D)),            # bq (pre-scaled)
                  const_spec((D, 2 * D)),        # Wk|Wv fused (bf16)
                  const_spec((1, 2 * D)),        # bk|bv fused
                  const_spec((D, D)),            # Wo (bf16, pre-transposed)
                  const_spec((1, D))],           # bo
        out_specs=[pl.BlockSpec((Bt, Lq, D), lambda b: (b, 0, 0)),
                   pl.BlockSpec((Bt, Lq, D), lambda b: (b, 0, 0))],
        out_shape=(jax.ShapeDtypeStruct((B, Lq, D), out_dtype),
                   jax.ShapeDtypeStruct((B, Lq, D), jnp.float32)),
        scratch_shapes=[pltpu.VMEM((Bt, Lq, D), jnp.bfloat16)],   # merged-head slab
        compiler_params=pltpu.CompilerParams(
            dimension_semantics=("parallel",),
            vmem_limit_bytes=vmem_limit),
    )


# -----------------------------------------------------------------------------
# One-time parameter preparation (hoisted out of the per-call path)
# -----------------------------------------------------------------------------
def prepare_params(params, n_head):
    """Pre-transpose nn.Linear weights (out,in)->(in,out), fuse Wk|Wv, fold the
    head_dim**-0.5 scale into Wq/bq, and cast matmul weights to bf16 (MXU-native).
    Biases / norm weight stay f32."""
    D = params["wq"].shape[0]
    scale = (D // n_head) ** -0.5
    return {
        "norm_w": params["norm_w"].reshape(1, D).astype(jnp.float32),
        "wq": (params["wq"].T * scale).astype(jnp.bfloat16),
        "bq": (params["bq"] * scale).reshape(1, D).astype(jnp.float32),
        "wkv": jnp.concatenate([params["wk"].T, params["wv"].T],
                               axis=1).astype(jnp.bfloat16),
        "bkv": jnp.concatenate([params["bk"], params["bv"]]
                               ).reshape(1, 2 * D).astype(jnp.float32),
        "wo": params["wo"].T.astype(jnp.bfloat16),
        "bo": params["bo"].reshape(1, D).astype(jnp.float32),
    }


# -----------------------------------------------------------------------------
# Wrapper
# -----------------------------------------------------------------------------
def cross_attention_wrapper(hidden_states, context, residual, prepared_params,
                            *, n_head, eps=1e-5, exact_softmax=False,
                            compute_rel_pos_bias=False, rel_pos_emb=None):
    B, Lq, D = hidden_states.shape
    _, Lk, _ = context.shape
    assert D % n_head == 0, "n_head must divide d_model"

    if residual is None:
        residual = jnp.zeros_like(hidden_states)

    if compute_rel_pos_bias:
        # Dead compute in the reference forward (the bias is never handed to the
        # attention call); off by default so no HBM traffic is wasted on it.
        _ = relative_position_bias(rel_pos_emb, B, Lq, Lk)

    # TODO(synk): inference_params / incremental KV-cache decode path not implemented.
    # TODO(synk): context_mask (key_padding_mask) not applied; default None path only.
    # TODO(synk): long-Lk sequences want an Lk tile axis + online (flash) softmax so
    #             scores/probs don't hold (Bt*H, Lq, Lk) f32 resident in VMEM; this
    #             limit is hit earliest on v7x (64 MiB per-TC VMEM).
    Bt = _pick_batch_tile(B, Lq, Lk, D, n_head)
    fn = _build_pallas_call(B, Bt, Lq, Lk, D, n_head, float(eps),
                            jnp.dtype(hidden_states.dtype), bool(exact_softmax),
                            _vmem_limit_bytes(Bt, Lq, Lk, D, n_head))
    p = prepared_params
    return fn(hidden_states, residual, context,
              p["norm_w"], p["wq"], p["bq"], p["wkv"], p["bkv"], p["wo"], p["bo"])


# -----------------------------------------------------------------------------
# RelativePositionBias (plain JAX; dead compute in the reference forward)
# -----------------------------------------------------------------------------
def relative_position_bias(emb_table, batch_size, qlen, klen,
                           num_buckets=32, max_distance=128):
    ctx_pos = jnp.arange(qlen)[:, None]
    mem_pos = jnp.arange(klen)[None, :]
    rel_pos = mem_pos - ctx_pos
    n = -rel_pos
    nb = num_buckets // 2
    ret = (n < 0).astype(jnp.int32) * nb
    n = jnp.abs(n)
    max_exact = nb // 2
    is_small = n < max_exact
    safe_n = jnp.maximum(n, 1).astype(jnp.float32)
    val_if_large = max_exact + (
        jnp.log(safe_n / max_exact) / math.log(max_distance / max_exact)
        * (nb - max_exact)).astype(jnp.int32)
    val_if_large = jnp.minimum(val_if_large, nb - 1)
    bucket = ret + jnp.where(is_small, n, val_if_large)
    values = emb_table[bucket]                        # (qlen, klen, H)
    values = jnp.transpose(values, (2, 0, 1))[None]   # (1, H, qlen, klen)
    values = jnp.tile(values, (batch_size, 1, 1, 1)).reshape(-1, qlen, klen)
    return values


# -----------------------------------------------------------------------------
# Deterministic parameter init + pure-JAX reference
# -----------------------------------------------------------------------------
def init_params(key, d_model, n_head, rel_pos_buckets=32):
    ks = jax.random.split(key, 10)
    s = 0.05
    return {
        "norm_w": jnp.ones((d_model,), jnp.float32),
        "wq": s * jax.random.normal(ks[0], (d_model, d_model), jnp.float32),
        "bq": s * jax.random.normal(ks[1], (d_model,), jnp.float32),
        "wk": s * jax.random.normal(ks[2], (d_model, d_model), jnp.float32),
        "bk": s * jax.random.normal(ks[3], (d_model,), jnp.float32),
        "wv": s * jax.random.normal(ks[4], (d_model, d_model), jnp.float32),
        "bv": s * jax.random.normal(ks[5], (d_model,), jnp.float32),
        "wo": s * jax.random.normal(ks[6], (d_model, d_model), jnp.float32),
        "bo": s * jax.random.normal(ks[7], (d_model,), jnp.float32),
        "rel_pos_emb": s * jax.random.normal(ks[8], (rel_pos_buckets, n_head),
                                             jnp.float32),
    }


def _reference(hidden_states, context, residual, params, n_head, eps):
    D = hidden_states.shape[-1]
    Dh = D // n_head
    resid = (hidden_states + residual).astype(jnp.float32)
    var = jnp.mean(resid * resid, axis=-1, keepdims=True)
    h = resid * jax.lax.rsqrt(var + eps) * params["norm_w"]
    q = (h @ params["wq"].T + params["bq"]) * (Dh ** -0.5)
    k = context @ params["wk"].T + params["bk"]
    v = context @ params["wv"].T + params["bv"]
    B, Lq, _ = q.shape
    Lk = k.shape[1]
    qh = q.reshape(B, Lq, n_head, Dh).transpose(0, 2, 1, 3)
    kh = k.reshape(B, Lk, n_head, Dh).transpose(0, 2, 1, 3)
    vh = v.reshape(B, Lk, n_head, Dh).transpose(0, 2, 1, 3)
    s = jnp.einsum('bhqd,bhkd->bhqk', qh, kh)
    p = jax.nn.softmax(s, axis=-1)
    o = jnp.einsum('bhqk,bhkd->bhqd', p, vh)
    attn = o.transpose(0, 2, 1, 3).reshape(B, Lq, D)
    out = attn @ params["wo"].T + params["bo"]
    return out, resid


if __name__ == "__main__":
    B, Lq, Lk, D, H = 2, 8, 16, 64, 8   # small shapes; head_dim = 8

    key = jax.random.PRNGKey(0)
    k_h, k_r, k_c, k_p = jax.random.split(key, 4)
    hidden_states = jax.random.normal(k_h, (B, Lq, D), jnp.float32)
    residual = jax.random.normal(k_r, (B, Lq, D), jnp.float32)
    context = jax.random.normal(k_c, (B, Lk, D), jnp.float32)
    params = init_params(k_p, D, H)
    prepared = prepare_params(params, n_head=H)

    fwd = jax.jit(partial(cross_attention_wrapper, n_head=H, eps=1e-5))
    out, res = fwd(hidden_states, context, residual, prepared)
    jax.block_until_ready((out, res))

    assert out.shape == (B, Lq, D) and res.shape == (B, Lq, D)
    assert res.dtype == jnp.float32

    # correctness vs. pure-JAX f32 reference (loose tol: kernel matmuls run in bf16)
    ref_out, ref_res = _reference(hidden_states, context, residual, params, H, 1e-5)
    np.testing.assert_allclose(np.asarray(res), np.asarray(ref_res),
                               rtol=1e-5, atol=1e-5)
    np.testing.assert_allclose(np.asarray(out), np.asarray(ref_out),
                               rtol=2e-2, atol=2e-2)
    print("KERNEL_OK")
</pallas_src>

<mosaic_0001>
module attributes {stable_mosaic.version = 11 : i64} {
  func.func @_cross_attn_kernel(%arg0: i32, %arg1: memref<1x8x64xf32, #tpu.memory_space<vmem>>, %arg2: memref<1x8x64xf32, #tpu.memory_space<vmem>>, %arg3: memref<1x16x64xf32, #tpu.memory_space<vmem>>, %arg4: memref<1x64xf32, #tpu.memory_space<vmem>>, %arg5: memref<64x64xbf16, #tpu.memory_space<vmem>>, %arg6: memref<1x64xf32, #tpu.memory_space<vmem>>, %arg7: memref<64x128xbf16, #tpu.memory_space<vmem>>, %arg8: memref<1x128xf32, #tpu.memory_space<vmem>>, %arg9: memref<64x64xbf16, #tpu.memory_space<vmem>>, %arg10: memref<1x64xf32, #tpu.memory_space<vmem>>, %arg11: memref<1x8x64xf32, #tpu.memory_space<vmem>>, %arg12: memref<1x8x64xf32, #tpu.memory_space<vmem>>, %arg13: memref<1x8x64xbf16, #tpu.memory_space<vmem>>) attributes {dimension_semantics = [#tpu.dimension_semantics<parallel>], iteration_bounds = array<i64: 2>, scalar_prefetch = 0 : i64, scratch_operands = 1 : i64, tpu.core_type = #tpu.core_type<tc>, window_params = [{transform_indices = @transform_0, window_bounds = array<i64: 1, 8, 64>}, {transform_indices = @transform_1, window_bounds = array<i64: 1, 8, 64>}, {transform_indices = @transform_2, window_bounds = array<i64: 1, 16, 64>}, {pipeline_mode = #tpu.pipeline_mode<synchronous>, transform_indices = @transform_3, window_bounds = array<i64: 1, 64>}, {pipeline_mode = #tpu.pipeline_mode<synchronous>, transform_indices = @transform_4, window_bounds = array<i64: 64, 64>}, {pipeline_mode = #tpu.pipeline_mode<synchronous>, transform_indices = @transform_5, window_bounds = array<i64: 1, 64>}, {pipeline_mode = #tpu.pipeline_mode<synchronous>, transform_indices = @transform_6, window_bounds = array<i64: 64, 128>}, {pipeline_mode = #tpu.pipeline_mode<synchronous>, transform_indices = @transform_7, window_bounds = array<i64: 1, 128>}, {pipeline_mode = #tpu.pipeline_mode<synchronous>, transform_indices = @transform_8, window_bounds = array<i64: 64, 64>}, {pipeline_mode = #tpu.pipeline_mode<synchronous>, transform_indices = @transform_9, window_bounds = array<i64: 1, 64>}, {transform_indices = @transform_10, window_bounds = array<i64: 1, 8, 64>}, {transform_indices = @transform_11, window_bounds = array<i64: 1, 8, 64>}]} {
    %c0 = arith.constant 0 : index
    %c0_0 = arith.constant 0 : index
    %c0_1 = arith.constant 0 : index
    %0 = vector.load %arg1[%c0, %c0_0, %c0_1] : memref<1x8x64xf32, #tpu.memory_space<vmem>>, vector<1x8x64xf32>
    %c0_2 = arith.constant 0 : index
    %c0_3 = arith.constant 0 : index
    %c0_4 = arith.constant 0 : index
    %1 = vector.load %arg2[%c0_2, %c0_3, %c0_4] : memref<1x8x64xf32, #tpu.memory_space<vmem>>, vector<1x8x64xf32>
    %2 = arith.addf %0, %1 : vector<1x8x64xf32>
    %c0_5 = arith.constant 0 : index
    %c0_6 = arith.constant 0 : index
    %c0_7 = arith.constant 0 : index
    %3 = vector.load %arg12[%c0_5, %c0_6, %c0_7] : memref<1x8x64xf32, #tpu.memory_space<vmem>>, vector<1x8x64xf32>
    tpu.vector_store %arg12[%c0_5, %c0_6, %c0_7], %2 {strides = array<i32>} : memref<1x8x64xf32, #tpu.memory_space<vmem>>, vector<1x8x64xf32>,
    %4 = arith.mulf %2, %2 : vector<1x8x64xf32>
    %cst = arith.constant dense<0.000000e+00> : vector<1x8xf32>
    %5 = vector.multi_reduction <add>, %4, %cst [2] : vector<1x8x64xf32> to vector<1x8xf32>
    %6 = vector.shape_cast %5 : vector<1x8xf32> to vector<1x8x1xf32>
    %cst_8 = arith.constant 6.400000e+01 : f32
    %7 = vector.broadcast %cst_8 : f32 to vector<1x8x1xf32>
    %8 = arith.divf %6, %7 : vector<1x8x1xf32>
    %cst_9 = arith.constant 9.99999974E-6 : f32
    %9 = vector.broadcast %cst_9 : f32 to vector<1x8x1xf32>
    %10 = arith.addf %8, %9 : vector<1x8x1xf32>
    %11 = math.rsqrt %10 : vector<1x8x1xf32>
    %12 = vector.broadcast %11 : vector<1x8x1xf32> to vector<1x8x64xf32>
    %13 = arith.mulf %2, %12 : vector<1x8x64xf32>
    %c0_10 = arith.constant 0 : index
    %c0_11 = arith.constant 0 : index
    %14 = vector.load %arg4[%c0_10, %c0_11] : memref<1x64xf32, #tpu.memory_space<vmem>>, vector<1x64xf32>
    %15 = vector.shape_cast %14 : vector<1x64xf32> to vector<1x1x64xf32>
    %16 = vector.broadcast %15 : vector<1x1x64xf32> to vector<1x8x64xf32>
    %17 = arith.mulf %13, %16 : vector<1x8x64xf32>
    %18 = vector.shape_cast %17 : vector<1x8x64xf32> to vector<8x64xf32>
    %19 = arith.truncf %18 : vector<8x64xf32> to vector<8x64xbf16>
    %c0_12 = arith.constant 0 : index
    %c0_13 = arith.constant 0 : index
    %20 = vector.load %arg5[%c0_12, %c0_13] : memref<64x64xbf16, #tpu.memory_space<vmem>>, vector<64x64xbf16>
    %cst_14 = arith.constant dense<0.000000e+00> : vector<8x64xf32>
    %21 = tpu.matmul %19, %20, %cst_14 {dimension_numbers = #tpu.dot_dimension_numbers<[1], [0], [0], [1], [0, 0, 1, 1], [], []>} : vector<8x64xbf16>, vector<64x64xbf16>, vector<8x64xf32> -> vector<8x64xf32>
    %c0_15 = arith.constant 0 : index
    %c0_16 = arith.constant 0 : index
    %22 = vector.load %arg6[%c0_15, %c0_16] : memref<1x64xf32, #tpu.memory_space<vmem>>, vector<1x64xf32>
    %23 = vector.broadcast %22 : vector<1x64xf32> to vector<8x64xf32>
    %24 = arith.addf %21, %23 : vector<8x64xf32>
    %c0_17 = arith.constant 0 : index
    %c0_18 = arith.constant 0 : index
    %c0_19 = arith.constant 0 : index
    %25 = vector.load %arg3[%c0_17, %c0_18, %c0_19] : memref<1x16x64xf32, #tpu.memory_space<vmem>>, vector<1x16x64xf32>
    %26 = vector.shape_cast %25 : vector<1x16x64xf32> to vector<16x64xf32>
    %27 = arith.truncf %26 : vector<16x64xf32> to vector<16x64xbf16>
    %c0_20 = arith.constant 0 : index
    %c0_21 = arith.constant 0 : index
    %28 = vector.load %arg7[%c0_20, %c0_21] : memref<64x128xbf16, #tpu.memory_space<vmem>>, vector<64x128xbf16>
    %cst_22 = arith.constant dense<0.000000e+00> : vector<16x128xf32>
    %29 = tpu.matmul %27, %28, %cst_22 {dimension_numbers = #tpu.dot_dimension_numbers<[1], [0], [0], [1], [0, 0, 1, 1], [], []>} : vector<16x64xbf16>, vector<64x128xbf16>, vector<16x128xf32> -> vector<16x128xf32>
    %c0_23 = arith.constant 0 : index
    %c0_24 = arith.constant 0 : index
    %30 = vector.load %arg8[%c0_23, %c0_24] : memref<1x128xf32, #tpu.memory_space<vmem>>, vector<1x128xf32>
    %31 = vector.broadcast %30 : vector<1x128xf32> to vector<16x128xf32>
    %32 = arith.addf %29, %31 : vector<16x128xf32>
    %33 = vector.shape_cast %24 : vector<8x64xf32> to vector<1x8x64xf32>
    %34 = arith.truncf %33 : vector<1x8x64xf32> to vector<1x8x64xbf16>
    %35 = vector.shape_cast %32 : vector<16x128xf32> to vector<1x16x128xf32>
    %36 = arith.truncf %35 : vector<1x16x128xf32> to vector<1x16x128xbf16>
    %37 = vector.extract_strided_slice %34 {offsets = [0, 0, 0], sizes = [1, 8, 8], strides = [1, 1, 1]} : vector<1x8x64xbf16> to vector<1x8x8xbf16>
    %38 = vector.extract_strided_slice %36 {offsets = [0, 0, 0], sizes = [1, 16, 8], strides = [1, 1, 1]} : vector<1x16x128xbf16> to vector<1x16x8xbf16>
    %39 = vector.extract_strided_slice %36 {offsets = [0, 0, 64], sizes = [1, 16, 8], strides = [1, 1, 1]} : vector<1x16x128xbf16> to vector<1x16x8xbf16>
    "tpu.trace_start"() <{level = 10 : i32, message = "bqd,bkd->bqk"}> : () -> ()
    %cst_25 = arith.constant dense<0.000000e+00> : vector<1x8x16xf32>
    %40 = tpu.matmul %37, %38, %cst_25 {dimension_numbers = #tpu.dot_dimension_numbers<[2], [2], [1], [1], [0, 0, 0, 1, 1, 1], [0], [0]>} : vector<1x8x8xbf16>, vector<1x16x8xbf16>, vector<1x8x16xf32> -> vector<1x8x16xf32>
    "tpu.trace_stop"() : () -> ()
    %cst_26 = arith.constant dense<0xFF800000> : vector<1x8xf32>
    %41 = vector.multi_reduction <maximumf>, %40, %cst_26 [2] : vector<1x8x16xf32> to vector<1x8xf32>
    %42 = vector.shape_cast %41 : vector<1x8xf32> to vector<1x8x1xf32>
    %43 = vector.broadcast %42 : vector<1x8x1xf32> to vector<1x8x16xf32>
    %44 = arith.subf %40, %43 : vector<1x8x16xf32>
    %45 = math.exp %44 : vector<1x8x16xf32>
    %cst_27 = arith.constant dense<0.000000e+00> : vector<1x8xf32>
    %46 = vector.multi_reduction <add>, %45, %cst_27 [2] : vector<1x8x16xf32> to vector<1x8xf32>
    %47 = vector.shape_cast %46 : vector<1x8xf32> to vector<1x8x1xf32>
    %48 = tpu.reciprocal %47 {approx = true} : vector<1x8x1xf32> -> vector<1x8x1xf32>
    %49 = vector.broadcast %48 : vector<1x8x1xf32> to vector<1x8x16xf32>
    %50 = arith.mulf %45, %49 : vector<1x8x16xf32>
    %51 = arith.truncf %50 : vector<1x8x16xf32> to vector<1x8x16xbf16>
    "tpu.trace_start"() <{level = 10 : i32, message = "bqk,bkd->bqd"}> : () -> ()
    %cst_28 = arith.constant dense<0.000000e+00> : vector<1x8x8xf32>
    %52 = tpu.matmul %51, %39, %cst_28 {dimension_numbers = #tpu.dot_dimension_numbers<[2], [1], [1], [2], [0, 0, 0, 1, 1, 2], [0], [0]>} : vector<1x8x16xbf16>, vector<1x16x8xbf16>, vector<1x8x8xf32> -> vector<1x8x8xf32>
    "tpu.trace_stop"() : () -> ()
    %53 = arith.truncf %52 : vector<1x8x8xf32> to vector<1x8x8xbf16>
    %c0_29 = arith.constant 0 : index
    %c0_30 = arith.constant 0 : index
    %c0_31 = arith.constant 0 : index
    %54 = vector.load %arg13[%c0_29, %c0_30, %c0_31] : memref<1x8x64xbf16, #tpu.memory_space<vmem>>, vector<1x8x8xbf16>
    tpu.vector_store %arg13[%c0_29, %c0_30, %c0_31], %53 {strides = array<i32>} : memref<1x8x64xbf16, #tpu.memory_space<vmem>>, vector<1x8x8xbf16>,
    %55 = vector.extract_strided_slice %34 {offsets = [0, 0, 8], sizes = [1, 8, 8], strides = [1, 1, 1]} : vector<1x8x64xbf16> to vector<1x8x8xbf16>
    %56 = vector.extract_strided_slice %36 {offsets = [0, 0, 8], sizes = [1, 16, 8], strides = [1, 1, 1]} : vector<1x16x128xbf16> to vector<1x16x8xbf16>
    %57 = vector.extract_strided_slice %36 {offsets = [0, 0, 72], sizes = [1, 16, 8], strides = [1, 1, 1]} : vector<1x16x128xbf16> to vector<1x16x8xbf16>
    "tpu.trace_start"() <{level = 10 : i32, message = "bqd,bkd->bqk"}> : () -> ()
    %cst_32 = arith.constant dense<0.000000e+00> : vector<1x8x16xf32>
    %58 = tpu.matmul %55, %56, %cst_32 {dimension_numbers = #tpu.dot_dimension_numbers<[2], [2], [1], [1], [0, 0, 0, 1, 1, 1], [0], [0]>} : vector<1x8x8xbf16>, vector<1x16x8xbf16>, vector<1x8x16xf32> -> vector<1x8x16xf32>
    "tpu.trace_stop"() : () -> ()
    %cst_33 = arith.constant dense<0xFF800000> : vector<1x8xf32>
    %59 = vector.multi_reduction <maximumf>, %58, %cst_33 [2] : vector<1x8x16xf32> to vector<1x8xf32>
    %60 = vector.shape_cast %59 : vector<1x8xf32> to vector<1x8x1xf32>
    %61 = vector.broadcast %60 : vector<1x8x1xf32> to vector<1x8x16xf32>
    %62 = arith.subf %58, %61 : vector<1x8x16xf32>
    %63 = math.exp %62 : vector<1x8x16xf32>
    %cst_34 = arith.constant dense<0.000000e+00> : vector<1x8xf32>
    %64 = vector.multi_reduction <add>, %63, %cst_34 [2] : vector<1x8x16xf32> to vector<1x8xf32>
    %65 = vector.shape_cast %64 : vector<1x8xf32> to vector<1x8x1xf32>
    %66 = tpu.reciprocal %65 {approx = true} : vector<1x8x1xf32> -> vector<1x8x1xf32>
    %67 = vector.broadcast %66 : vector<1x8x1xf32> to vector<1x8x16xf32>
    %68 = arith.mulf %63, %67 : vector<1x8x16xf32>
    %69 = arith.truncf %68 : vector<1x8x16xf32> to vector<1x8x16xbf16>
    "tpu.trace_start"() <{level = 10 : i32, message = "bqk,bkd->bqd"}> : () -> ()
    %cst_35 = arith.constant dense<0.000000e+00> : vector<1x8x8xf32>
    %70 = tpu.matmul %69, %57, %cst_35 {dimension_numbers = #tpu.dot_dimension_numbers<[2], [1], [1], [2], [0, 0, 0, 1, 1, 2], [0], [0]>} : vector<1x8x16xbf16>, vector<1x16x8xbf16>, vector<1x8x8xf32> -> vector<1x8x8xf32>
    "tpu.trace_stop"() : () -> ()
    %71 = arith.truncf %70 : vector<1x8x8xf32> to vector<1x8x8xbf16>
    %c0_36 = arith.constant 0 : index
    %c0_37 = arith.constant 0 : index
    %c8 = arith.constant 8 : index
    %72 = vector.load %arg13[%c0_36, %c0_37, %c8] : memref<1x8x64xbf16, #tpu.memory_space<vmem>>, vector<1x8x8xbf16>
    tpu.vector_store %arg13[%c0_36, %c0_37, %c8], %71 {strides = array<i32>} : memref<1x8x64xbf16, #tpu.memory_space<vmem>>, vector<1x8x8xbf16>,
    %73 = vector.extract_strided_slice %34 {offsets = [0, 0, 16], sizes = [1, 8, 8], strides = [1, 1, 1]} : vector<1x8x64xbf16> to vector<1x8x8xbf16>
    %74 = vector.extract_strided_slice %36 {offsets = [0, 0, 16], sizes = [1, 16, 8], strides = [1, 1, 1]} : vector<1x16x128xbf16> to vector<1x16x8xbf16>
    %75 = vector.extract_strided_slice %36 {offsets = [0, 0, 80], sizes = [1, 16, 8], strides = [1, 1, 1]} : vector<1x16x128xbf16> to vector<1x16x8xbf16>
    "tpu.trace_start"() <{level = 10 : i32, message = "bqd,bkd->bqk"}> : () -> ()
    %cst_38 = arith.constant dense<0.000000e+00> : vector<1x8x16xf32>
    %76 = tpu.matmul %73, %74, %cst_38 {dimension_numbers = #tpu.dot_dimension_numbers<[2], [2], [1], [1], [0, 0, 0, 1, 1, 1], [0], [0]>} : vector<1x8x8xbf16>, vector<1x16x8xbf16>, vector<1x8x16xf32> -> vector<1x8x16xf32>
    "tpu.trace_stop"() : () -> ()
    %cst_39 = arith.constant dense<0xFF800000> : vector<1x8xf32>
    %77 = vector.multi_reduction <maximumf>, %76, %cst_39 [2] : vector<1x8x16xf32> to vector<1x8xf32>
    %78 = vector.shape_cast %77 : vector<1x8xf32> to vector<1x8x1xf32>
    %79 = vector.broadcast %78 : vector<1x8x1xf32> to vector<1x8x16xf32>
    %80 = arith.subf %76, %79 : vector<1x8x16xf32>
    %81 = math.exp %80 : vector<1x8x16xf32>
    %cst_40 = arith.constant dense<0.000000e+00> : vector<1x8xf32>
    %82 = vector.multi_reduction <add>, %81, %cst_40 [2] : vector<1x8x16xf32> to vector<1x8xf32>
    %83 = vector.shape_cast %82 : vector<1x8xf32> to vector<1x8x1xf32>
    %84 = tpu.reciprocal %83 {approx = true} : vector<1x8x1xf32> -> vector<1x8x1xf32>
    %85 = vector.broadcast %84 : vector<1x8x1xf32> to vector<1x8x16xf32>
    %86 = arith.mulf %81, %85 : vector<1x8x16xf32>
    %87 = arith.truncf %86 : vector<1x8x16xf32> to vector<1x8x16xbf16>
    "tpu.trace_start"() <{level = 10 : i32, message = "bqk,bkd->bqd"}> : () -> ()
    %cst_41 = arith.constant dense<0.000000e+00> : vector<1x8x8xf32>
    %88 = tpu.matmul %87, %75, %cst_41 {dimension_numbers = #tpu.dot_dimension_numbers<[2], [1], [1], [2], [0, 0, 0, 1, 1, 2], [0], [0]>} : vector<1x8x16xbf16>, vector<1x16x8xbf16>, vector<1x8x8xf32> -> vector<1x8x8xf32>
    "tpu.trace_stop"() : () -> ()
    %89 = arith.truncf %88 : vector<1x8x8xf32> to vector<1x8x8xbf16>
    %c0_42 = arith.constant 0 : index
    %c0_43 = arith.constant 0 : index
    %c16 = arith.constant 16 : index
    %90 = vector.load %arg13[%c0_42, %c0_43, %c16] : memref<1x8x64xbf16, #tpu.memory_space<vmem>>, vector<1x8x8xbf16>
    tpu.vector_store %arg13[%c0_42, %c0_43, %c16], %89 {strides = array<i32>} : memref<1x8x64xbf16, #tpu.memory_space<vmem>>, vector<1x8x8xbf16>,
    %91 = vector.extract_strided_slice %34 {offsets = [0, 0, 24], sizes = [1, 8, 8], strides = [1, 1, 1]} : vector<1x8x64xbf16> to vector<1x8x8xbf16>
    %92 = vector.extract_strided_slice %36 {offsets = [0, 0, 24], sizes = [1, 16, 8], strides = [1, 1, 1]} : vector<1x16x128xbf16> to vector<1x16x8xbf16>
    %93 = vector.extract_strided_slice %36 {offsets = [0, 0, 88], sizes = [1, 16, 8], strides = [1, 1, 1]} : vector<1x16x128xbf16> to vector<1x16x8xbf16>
    "tpu.trace_start"() <{level = 10 : i32, message = "bqd,bkd->bqk"}> : () -> ()
    %cst_44 = arith.constant dense<0.000000e+00> : vector<1x8x16xf32>
    %94 = tpu.matmul %91, %92, %cst_44 {dimension_numbers = #tpu.dot_dimension_numbers<[2], [2], [1], [1], [0, 0, 0, 1, 1, 1], [0], [0]>} : vector<1x8x8xbf16>, vector<1x16x8xbf16>, vector<1x8x16xf32> -> vector<1x8x16xf32>
    "tpu.trace_stop"() : () -> ()
    %cst_45 = arith.constant dense<0xFF800000> : vector<1x8xf32>
    %95 = vector.multi_reduction <maximumf>, %94, %cst_45 [2] : vector<1x8x16xf32> to vector<1x8xf32>
    %96 = vector.shape_cast %95 : vector<1x8xf32> to vector<1x8x1xf32>
    %97 = vector.broadcast %96 : vector<1x8x1xf32> to vector<1x8x16xf32>
    %98 = arith.subf %94, %97 : vector<1x8x16xf32>
    %99 = math.exp %98 : vector<1x8x16xf32>
    %cst_46 = arith.constant dense<0.000000e+00> : vector<1x8xf32>
    %100 = vector.multi_reduction <add>, %99, %cst_46 [2] : vector<1x8x16xf32> to vector<1x8xf32>
    %101 = vector.shape_cast %100 : vector<1x8xf32> to vector<1x8x1xf32>
    %102 = tpu.reciprocal %101 {approx = true} : vector<1x8x1xf32> -> vector<1x8x1xf32>
    %103 = vector.broadcast %102 : vector<1x8x1xf32> to vector<1x8x16xf32>
    %104 = arith.mulf %99, %103 : vector<1x8x16xf32>
    %105 = arith.truncf %104 : vector<1x8x16xf32> to vector<1x8x16xbf16>
    "tpu.trace_start"() <{level = 10 : i32, message = "bqk,bkd->bqd"}> : () -> ()
    %cst_47 = arith.constant dense<0.000000e+00> : vector<1x8x8xf32>
    %106 = tpu.matmul %105, %93, %cst_47 {dimension_numbers = #tpu.dot_dimension_numbers<[2], [1], [1], [2], [0, 0, 0, 1, 1, 2], [0], [0]>} : vector<1x8x16xbf16>, vector<1x16x8xbf16>, vector<1x8x8xf32> -> vector<1x8x8xf32>
    "tpu.trace_stop"() : () -> ()
    %107 = arith.truncf %106 : vector<1x8x8xf32> to vector<1x8x8xbf16>
    %c0_48 = arith.constant 0 : index
    %c0_49 = arith.constant 0 : index
    %c24 = arith.constant 24 : index
    %108 = vector.load %arg13[%c0_48, %c0_49, %c24] : memref<1x8x64xbf16, #tpu.memory_space<vmem>>, vector<1x8x8xbf16>
    tpu.vector_store %arg13[%c0_48, %c0_49, %c24], %107 {strides = array<i32>} : memref<1x8x64xbf16, #tpu.memory_space<vmem>>, vector<1x8x8xbf16>,
    %109 = vector.extract_strided_slice %34 {offsets = [0, 0, 32], sizes = [1, 8, 8], strides = [1, 1, 1]} : vector<1x8x64xbf16> to vector<1x8x8xbf16>
    %110 = vector.extract_strided_slice %36 {offsets = [0, 0, 32], sizes = [1, 16, 8], strides = [1, 1, 1]} : vector<1x16x128xbf16> to vector<1x16x8xbf16>
    %111 = vector.extract_strided_slice %36 {offsets = [0, 0, 96], sizes = [1, 16, 8], strides = [1, 1, 1]} : vector<1x16x128xbf16> to vector<1x16x8xbf16>
    "tpu.trace_start"() <{level = 10 : i32, message = "bqd,bkd->bqk"}> : () -> ()
    %cst_50 = arith.constant dense<0.000000e+00> : vector<1x8x16xf32>
    %112 = tpu.matmul %109, %110, %cst_50 {dimension_numbers = #tpu.dot_dimension_numbers<[2], [2], [1], [1], [0, 0, 0, 1, 1, 1], [0], [0]>} : vector<1x8x8xbf16>, vector<1x16x8xbf16>, vector<1x8x16xf32> -> vector<1x8x16xf32>
    "tpu.trace_stop"() : () -> ()
    %cst_51 = arith.constant dense<0xFF800000> : vector<1x8xf32>
    %113 = vector.multi_reduction <maximumf>, %112, %cst_51 [2] : vector<1x8x16xf32> to vector<1x8xf32>
    %114 = vector.shape_cast %113 : vector<1x8xf32> to vector<1x8x1xf32>
    %115 = vector.broadcast %114 : vector<1x8x1xf32> to vector<1x8x16xf32>
    %116 = arith.subf %112, %115 : vector<1x8x16xf32>
    %117 = math.exp %116 : vector<1x8x16xf32>
    %cst_52 = arith.constant dense<0.000000e+00> : vector<1x8xf32>
    %118 = vector.multi_reduction <add>, %117, %cst_52 [2] : vector<1x8x16xf32> to vector<1x8xf32>
    %119 = vector.shape_cast %118 : vector<1x8xf32> to vector<1x8x1xf32>
    %120 = tpu.reciprocal %119 {approx = true} : vector<1x8x1xf32> -> vector<1x8x1xf32>
    %121 = vector.broadcast %120 : vector<1x8x1xf32> to vector<1x8x16xf32>
    %122 = arith.mulf %117, %121 : vector<1x8x16xf32>
    %123 = arith.truncf %122 : vector<1x8x16xf32> to vector<1x8x16xbf16>
    "tpu.trace_start"() <{level = 10 : i32, message = "bqk,bkd->bqd"}> : () -> ()
    %cst_53 = arith.constant dense<0.000000e+00> : vector<1x8x8xf32>
    %124 = tpu.matmul %123, %111, %cst_53 {dimension_numbers = #tpu.dot_dimension_numbers<[2], [1], [1], [2], [0, 0, 0, 1, 1, 2], [0], [0]>} : vector<1x8x16xbf16>, vector<1x16x8xbf16>, vector<1x8x8xf32> -> vector<1x8x8xf32>
    "tpu.trace_stop"() : () -> ()
    %125 = arith.truncf %124 : vector<1x8x8xf32> to vector<1x8x8xbf16>
    %c0_54 = arith.constant 0 : index
    %c0_55 = arith.constant 0 : index
    %c32 = arith.constant 32 : index
    %126 = vector.load %arg13[%c0_54, %c0_55, %c32] : memref<1x8x64xbf16, #tpu.memory_space<vmem>>, vector<1x8x8xbf16>
    tpu.vector_store %arg13[%c0_54, %c0_55, %c32], %125 {strides = array<i32>} : memref<1x8x64xbf16, #tpu.memory_space<vmem>>, vector<1x8x8xbf16>,
    %127 = vector.extract_strided_slice %34 {offsets = [0, 0, 40], sizes = [1, 8, 8], strides = [1, 1, 1]} : vector<1x8x64xbf16> to vector<1x8x8xbf16>
    %128 = vector.extract_strided_slice %36 {offsets = [0, 0, 40], sizes = [1, 16, 8], strides = [1, 1, 1]} : vector<1x16x128xbf16> to vector<1x16x8xbf16>
    %129 = vector.extract_strided_slice %36 {offsets = [0, 0, 104], sizes = [1, 16, 8], strides = [1, 1, 1]} : vector<1x16x128xbf16> to vector<1x16x8xbf16>
    "tpu.trace_start"() <{level = 10 : i32, message = "bqd,bkd->bqk"}> : () -> ()
    %cst_56 = arith.constant dense<0.000000e+00> : vector<1x8x16xf32>
    %130 = tpu.matmul %127, %128, %cst_56 {dimension_numbers = #tpu.dot_dimension_numbers<[2], [2], [1], [1], [0, 0, 0, 1, 1, 1], [0], [0]>} : vector<1x8x8xbf16>, vector<1x16x8xbf16>, vector<1x8x16xf32> -> vector<1x8x16xf32>
    "tpu.trace_stop"() : () -> ()
    %cst_57 = arith.constant dense<0xFF800000> : vector<1x8xf32>
    %131 = vector.multi_reduction <maximumf>, %130, %cst_57 [2] : vector<1x8x16xf32> to vector<1x8xf32>
    %132 = vector.shape_cast %131 : vector<1x8xf32> to vector<1x8x1xf32>
    %133 = vector.broadcast %132 : vector<1x8x1xf32> to vector<1x8x16xf32>
    %134 = arith.subf %130, %133 : vector<1x8x16xf32>
    %135 = math.exp %134 : vector<1x8x16xf32>
    %cst_58 = arith.constant dense<0.000000e+00> : vector<1x8xf32>
    %136 = vector.multi_reduction <add>, %135, %cst_58 [2] : vector<1x8x16xf32> to vector<1x8xf32>
    %137 = vector.shape_cast %136 : vector<1x8xf32> to vector<1x8x1xf32>
    %138 = tpu.reciprocal %137 {approx = true} : vector<1x8x1xf32> -> vector<1x8x1xf32>
    %139 = vector.broadcast %138 : vector<1x8x1xf32> to vector<1x8x16xf32>
    %140 = arith.mulf %135, %139 : vector<1x8x16xf32>
    %141 = arith.truncf %140 : vector<1x8x16xf32> to vector<1x8x16xbf16>
    "tpu.trace_start"() <{level = 10 : i32, message = "bqk,bkd->bqd"}> : () -> ()
    %cst_59 = arith.constant dense<0.000000e+00> : vector<1x8x8xf32>
    %142 = tpu.matmul %141, %129, %cst_59 {dimension_numbers = #tpu.dot_dimension_numbers<[2], [1], [1], [2], [0, 0, 0, 1, 1, 2], [0], [0]>} : vector<1x8x16xbf16>, vector<1x16x8xbf16>, vector<1x8x8xf32> -> vector<1x8x8xf32>
    "tpu.trace_stop"() : () -> ()
    %143 = arith.truncf %142 : vector<1x8x8xf32> to vector<1x8x8xbf16>
    %c0_60 = arith.constant 0 : index
    %c0_61 = arith.constant 0 : index
    %c40 = arith.constant 40 : index
    %144 = vector.load %arg13[%c0_60, %c0_61, %c40] : memref<1x8x64xbf16, #tpu.memory_space<vmem>>, vector<1x8x8xbf16>
    tpu.vector_store %arg13[%c0_60, %c0_61, %c40], %143 {strides = array<i32>} : memref<1x8x64xbf16, #tpu.memory_space<vmem>>, vector<1x8x8xbf16>,
    %145 = vector.extract_strided_slice %34 {offsets = [0, 0, 48], sizes = [1, 8, 8], strides = [1, 1, 1]} : vector<1x8x64xbf16> to vector<1x8x8xbf16>
    %146 = vector.extract_strided_slice %36 {offsets = [0, 0, 48], sizes = [1, 16, 8], strides = [1, 1, 1]} : vector<1x16x128xbf16> to vector<1x16x8xbf16>
    %147 = vector.extract_strided_slice %36 {offsets = [0, 0, 112], sizes = [1, 16, 8], strides = [1, 1, 1]} : vector<1x16x128xbf16> to vector<1x16x8xbf16>
    "tpu.trace_start"() <{level = 10 : i32, message = "bqd,bkd->bqk"}> : () -> ()
    %cst_62 = arith.constant dense<0.000000e+00> : vector<1x8x16xf32>
    %148 = tpu.matmul %145, %146, %cst_62 {dimension_numbers = #tpu.dot_dimension_numbers<[2], [2], [1], [1], [0, 0, 0, 1, 1, 1], [0], [0]>} : vector<1x8x8xbf16>, vector<1x16x8xbf16>, vector<1x8x16xf32> -> vector<1x8x16xf32>
    "tpu.trace_stop"() : () -> ()
    %cst_63 = arith.constant dense<0xFF800000> : vector<1x8xf32>
    %149 = vector.multi_reduction <maximumf>, %148, %cst_63 [2] : vector<1x8x16xf32> to vector<1x8xf32>
    %150 = vector.shape_cast %149 : vector<1x8xf32> to vector<1x8x1xf32>
    %151 = vector.broadcast %150 : vector<1x8x1xf32> to vector<1x8x16xf32>
    %152 = arith.subf %148, %151 : vector<1x8x16xf32>
    %153 = math.exp %152 : vector<1x8x16xf32>
    %cst_64 = arith.constant dense<0.000000e+00> : vector<1x8xf32>
    %154 = vector.multi_reduction <add>, %153, %cst_64 [2] : vector<1x8x16xf32> to vector<1x8xf32>
    %155 = vector.shape_cast %154 : vector<1x8xf32> to vector<1x8x1xf32>
    %156 = tpu.reciprocal %155 {approx = true} : vector<1x8x1xf32> -> vector<1x8x1xf32>
    %157 = vector.broadcast %156 : vector<1x8x1xf32> to vector<1x8x16xf32>
    %158 = arith.mulf %153, %157 : vector<1x8x16xf32>
    %159 = arith.truncf %158 : vector<1x8x16xf32> to vector<1x8x16xbf16>
    "tpu.trace_start"() <{level = 10 : i32, message = "bqk,bkd->bqd"}> : () -> ()
    %cst_65 = arith.constant dense<0.000000e+00> : vector<1x8x8xf32>
    %160 = tpu.matmul %159, %147, %cst_65 {dimension_numbers = #tpu.dot_dimension_numbers<[2], [1], [1], [2], [0, 0, 0, 1, 1, 2], [0], [0]>} : vector<1x8x16xbf16>, vector<1x16x8xbf16>, vector<1x8x8xf32> -> vector<1x8x8xf32>
    "tpu.trace_stop"() : () -> ()
    %161 = arith.truncf %160 : vector<1x8x8xf32> to vector<1x8x8xbf16>
    %c0_66 = arith.constant 0 : index
    %c0_67 = arith.constant 0 : index
    %c48 = arith.constant 48 : index
    %162 = vector.load %arg13[%c0_66, %c0_67, %c48] : memref<1x8x64xbf16, #tpu.memory_space<vmem>>, vector<1x8x8xbf16>
    tpu.vector_store %arg13[%c0_66, %c0_67, %c48], %161 {strides = array<i32>} : memref<1x8x64xbf16, #tpu.memory_space<vmem>>, vector<1x8x8xbf16>,
    %163 = vector.extract_strided_slice %34 {offsets = [0, 0, 56], sizes = [1, 8, 8], strides = [1, 1, 1]} : vector<1x8x64xbf16> to vector<1x8x8xbf16>
    %164 = vector.extract_strided_slice %36 {offsets = [0, 0, 56], sizes = [1, 16, 8], strides = [1, 1, 1]} : vector<1x16x128xbf16> to vector<1x16x8xbf16>
    %165 = vector.extract_strided_slice %36 {offsets = [0, 0, 120], sizes = [1, 16, 8], strides = [1, 1, 1]} : vector<1x16x128xbf16> to vector<1x16x8xbf16>
    "tpu.trace_start"() <{level = 10 : i32, message = "bqd,bkd->bqk"}> : () -> ()
    %cst_68 = arith.constant dense<0.000000e+00> : vector<1x8x16xf32>
    %166 = tpu.matmul %163, %164, %cst_68 {dimension_numbers = #tpu.dot_dimension_numbers<[2], [2], [1], [1], [0, 0, 0, 1, 1, 1], [0], [0]>} : vector<1x8x8xbf16>, vector<1x16x8xbf16>, vector<1x8x16xf32> -> vector<1x8x16xf32>
    "tpu.trace_stop"() : () -> ()
    %cst_69 = arith.constant dense<0xFF800000> : vector<1x8xf32>
    %167 = vector.multi_reduction <maximumf>, %166, %cst_69 [2] : vector<1x8x16xf32> to vector<1x8xf32>
    %168 = vector.shape_cast %167 : vector<1x8xf32> to vector<1x8x1xf32>
    %169 = vector.broadcast %168 : vector<1x8x1xf32> to vector<1x8x16xf32>
    %170 = arith.subf %166, %169 : vector<1x8x16xf32>
    %171 = math.exp %170 : vector<1x8x16xf32>
    %cst_70 = arith.constant dense<0.000000e+00> : vector<1x8xf32>
    %172 = vector.multi_reduction <add>, %171, %cst_70 [2] : vector<1x8x16xf32> to vector<1x8xf32>
    %173 = vector.shape_cast %172 : vector<1x8xf32> to vector<1x8x1xf32>
    %174 = tpu.reciprocal %173 {approx = true} : vector<1x8x1xf32> -> vector<1x8x1xf32>
    %175 = vector.broadcast %174 : vector<1x8x1xf32> to vector<1x8x16xf32>
    %176 = arith.mulf %171, %175 : vector<1x8x16xf32>
    %177 = arith.truncf %176 : vector<1x8x16xf32> to vector<1x8x16xbf16>
    "tpu.trace_start"() <{level = 10 : i32, message = "bqk,bkd->bqd"}> : () -> ()
    %cst_71 = arith.constant dense<0.000000e+00> : vector<1x8x8xf32>
    %178 = tpu.matmul %177, %165, %cst_71 {dimension_numbers = #tpu.dot_dimension_numbers<[2], [1], [1], [2], [0, 0, 0, 1, 1, 2], [0], [0]>} : vector<1x8x16xbf16>, vector<1x16x8xbf16>, vector<1x8x8xf32> -> vector<1x8x8xf32>
    "tpu.trace_stop"() : () -> ()
    %179 = arith.truncf %178 : vector<1x8x8xf32> to vector<1x8x8xbf16>
    %c0_72 = arith.constant 0 : index
    %c0_73 = arith.constant 0 : index
    %c56 = arith.constant 56 : index
    %180 = vector.load %arg13[%c0_72, %c0_73, %c56] : memref<1x8x64xbf16, #tpu.memory_space<vmem>>, vector<1x8x8xbf16>
    tpu.vector_store %arg13[%c0_72, %c0_73, %c56], %179 {strides = array<i32>} : memref<1x8x64xbf16, #tpu.memory_space<vmem>>, vector<1x8x8xbf16>,
    %c0_74 = arith.constant 0 : index
    %c0_75 = arith.constant 0 : index
    %c0_76 = arith.constant 0 : index
    %181 = vector.load %arg13[%c0_74, %c0_75, %c0_76] : memref<1x8x64xbf16, #tpu.memory_space<vmem>>, vector<1x8x64xbf16>
    %182 = vector.shape_cast %181 : vector<1x8x64xbf16> to vector<8x64xbf16>
    %c0_77 = arith.constant 0 : index
    %c0_78 = arith.constant 0 : index
    %183 = vector.load %arg9[%c0_77, %c0_78] : memref<64x64xbf16, #tpu.memory_space<vmem>>, vector<64x64xbf16>
    %cst_79 = arith.constant dense<0.000000e+00> : vector<8x64xf32>
    %184 = tpu.matmul %182, %183, %cst_79 {dimension_numbers = #tpu.dot_dimension_numbers<[1], [0], [0], [1], [0, 0, 1, 1], [], []>} : vector<8x64xbf16>, vector<64x64xbf16>, vector<8x64xf32> -> vector<8x64xf32>
    %c0_80 = arith.constant 0 : index
    %c0_81 = arith.constant 0 : index
    %185 = vector.load %arg10[%c0_80, %c0_81] : memref<1x64xf32, #tpu.memory_space<vmem>>, vector<1x64xf32>
    %186 = vector.broadcast %185 : vector<1x64xf32> to vector<8x64xf32>
    %187 = arith.addf %184, %186 : vector<8x64xf32>
    %188 = vector.shape_cast %187 : vector<8x64xf32> to vector<1x8x64xf32>
    %c0_82 = arith.constant 0 : index
    %c0_83 = arith.constant 0 : index
    %c0_84 = arith.constant 0 : index
    %189 = vector.load %arg11[%c0_82, %c0_83, %c0_84] : memref<1x8x64xf32, #tpu.memory_space<vmem>>, vector<1x8x64xf32>
    tpu.vector_store %arg11[%c0_82, %c0_83, %c0_84], %188 {strides = array<i32>} : memref<1x8x64xf32, #tpu.memory_space<vmem>>, vector<1x8x64xf32>,
    return
  }
  func.func @transform_0(%arg0: i32) -> (i32, i32, i32) {
    %c0_i32 = arith.constant 0 : i32
    %c0_i32_0 = arith.constant 0 : i32
    %c0_i32_1 = arith.constant 0 : i32
    return %arg0, %c0_i32, %c0_i32_0 : i32, i32, i32
  }
  func.func @transform_1(%arg0: i32) -> (i32, i32, i32) {
    %c0_i32 = arith.constant 0 : i32
    %c0_i32_0 = arith.constant 0 : i32
    %c0_i32_1 = arith.constant 0 : i32
    return %arg0, %c0_i32, %c0_i32_0 : i32, i32, i32
  }
  func.func @transform_2(%arg0: i32) -> (i32, i32, i32) {
    %c0_i32 = arith.constant 0 : i32
    %c0_i32_0 = arith.constant 0 : i32
    %c0_i32_1 = arith.constant 0 : i32
    return %arg0, %c0_i32, %c0_i32_0 : i32, i32, i32
  }
  func.func @transform_3(%arg0: i32) -> (i32, i32) {
    %c0_i32 = arith.constant 0 : i32
    %c0_i32_0 = arith.constant 0 : i32
    %c0_i32_1 = arith.constant 0 : i32
    return %c0_i32, %c0_i32_0 : i32, i32
  }
  func.func @transform_4(%arg0: i32) -> (i32, i32) {
    %c0_i32 = arith.constant 0 : i32
    %c0_i32_0 = arith.constant 0 : i32
    %c0_i32_1 = arith.constant 0 : i32
    return %c0_i32, %c0_i32_0 : i32, i32
  }
  func.func @transform_5(%arg0: i32) -> (i32, i32) {
    %c0_i32 = arith.constant 0 : i32
    %c0_i32_0 = arith.constant 0 : i32
    %c0_i32_1 = arith.constant 0 : i32
    return %c0_i32, %c0_i32_0 : i32, i32
  }
  func.func @transform_6(%arg0: i32) -> (i32, i32) {
    %c0_i32 = arith.constant 0 : i32
    %c0_i32_0 = arith.constant 0 : i32
    %c0_i32_1 = arith.constant 0 : i32
    return %c0_i32, %c0_i32_0 : i32, i32
  }
  func.func @transform_7(%arg0: i32) -> (i32, i32) {
    %c0_i32 = arith.constant 0 : i32
    %c0_i32_0 = arith.constant 0 : i32
    %c0_i32_1 = arith.constant 0 : i32
    return %c0_i32, %c0_i32_0 : i32, i32
  }
  func.func @transform_8(%arg0: i32) -> (i32, i32) {
    %c0_i32 = arith.constant 0 : i32
    %c0_i32_0 = arith.constant 0 : i32
    %c0_i32_1 = arith.constant 0 : i32
    return %c0_i32, %c0_i32_0 : i32, i32
  }
  func.func @transform_9(%arg0: i32) -> (i32, i32) {
    %c0_i32 = arith.constant 0 : i32
    %c0_i32_0 = arith.constant 0 : i32
    %c0_i32_1 = arith.constant 0 : i32
    return %c0_i32, %c0_i32_0 : i32, i32
  }
  func.func @transform_10(%arg0: i32) -> (i32, i32, i32) {
    %c0_i32 = arith.constant 0 : i32
    %c0_i32_0 = arith.constant 0 : i32
    %c0_i32_1 = arith.constant 0 : i32
    return %arg0, %c0_i32, %c0_i32_0 : i32, i32, i32
  }
  func.func @transform_11(%arg0: i32) -> (i32, i32, i32) {
    %c0_i32 = arith.constant 0 : i32
    %c0_i32_0 = arith.constant 0 : i32
    %c0_i32_1 = arith.constant 0 : i32
    return %arg0, %c0_i32, %c0_i32_0 : i32, i32, i32
  }
}

</mosaic_0001>

<bundles_post_ra>
// kernel: cross_attention_wrapper.1
= control target key start
LH: loop header
LB: loop body
LE: loop exit
PB: predicated region body
PF: predicated region fallthrough
CT: control target
= control target key end

     0   :  { %s3391_s0 = inlined_call_operand.hbm [shape: f32[2,8,64], index: 0, kind: input, shape index: {}]   ;;  %s3392_s1 = inlined_call_operand.hbm [shape: f32[2,8,64], index: 1, kind: input, shape index: {}]   ;;  %s3393_s2 = inlined_call_operand.hbm [shape: f32[2,16,64], index: 2, kind: input, shape index: {}]   ;;  %s3394_s3 = inlined_call_operand.vmem [shape: f32[1,64], index: 3, kind: input, shape index: {}]   ;;  %s3395_s4 = inlined_call_operand.vmem [shape: bf16[64,64], index: 4, kind: input, shape index: {}]   ;;  %s3396_s5 = inlined_call_operand.vmem [shape: f32[1,64], index: 5, kind: input, shape index: {}]   ;;  %s3397_s6 = inlined_call_operand.hbm [shape: bf16[64,128], index: 6, kind: input, shape index: {}]   ;;  %s3398_s7 = inlined_call_operand.hbm [shape: f32[1,128], index: 7, kind: input, shape index: {}]   ;;  %s3399_s8 = inlined_call_operand.hbm [shape: bf16[64,64], index: 8, kind: input, shape index: {}]   ;;  %s3400_s9 = inlined_call_operand.hbm [shape: f32[1,64], index: 9, kind: input, shape index: {}]   ;;  %s3401_s10 = inlined_call_operand.hbm [shape: f32[2,8,64], index: 10, kind: output, shape index: {0}]   ;;  %s3402_s11 = inlined_call_operand.hbm [shape: f32[2,8,64], index: 11, kind: output, shape index: {1}]  }
   0x1   :  { %3426 = sst [smem:[#allocation30_spill]] %s3392_s1 }
   0x2   :  { %3427 = sst [smem:[#allocation31_spill]] %s3397_s6 }
   0x3   :  { %3428 = sst [smem:[#allocation32_spill]] %s3399_s8 }
   0x4   :  { %3429 = sst [smem:[#allocation33_spill]] %s3401_s10 }
   0x5   :  { %3430 = sst [smem:[#allocation34_spill]] %s3402_s11 }
   0x6   :  { %17 = vsyncpa [#allocation4], 0 }
   0x7   :  { %19 = vsyncpa [#allocation4 + $0x1], 0 }
   0x8   :  { %20 = vsyncpa [#allocation7], 0 }
   0x9   :  { %22 = vsyncpa [#allocation7 + $0x1], 0 }
   0xa   :  { %23 = vsyncpa [#allocation10], 0 }
   0xb   :  { %24 = vsyncpa [#allocation13], 0 }
   0xc   :  { %25 = vsyncpa [#allocation5], 0 }
   0xd   :  { %27 = vsyncpa [#allocation5 + $0x1], 0 }
   0xe   :  { %28 = vsyncpa [#allocation17], 0 }
   0xf   :  { %30 = vsyncpa [#allocation17 + $0x1], 0  ;;  %s2796_s17 = smov 0   ;;  %s2798_s18 = smov 0  }
  0x10   :  { %s2800_s19 = smov 0   ;;  %s2802_s20 = smov 0  }
  0x11 LB: > { %3431 = sst [smem:[#allocation24_spill]] %s2692_s17  ;;  %s2706_s21 = smov [#allocation9]   ;;  %s2704_s20 = sphi %s2802_s20, %s3468_s20   ;;  %s2700_s19 = sphi %s2800_s19, %s3470_s19   ;;  %s2696_s18 = sphi %s2798_s18, %s3472_s18   ;;  %s2692_s17 = sphi %s2796_s17, %s3471_s17  }
  0x12   : > { %3432 = sst [smem:[#allocation25_spill]] %s2700_s19  ;;  %s339_s22 = sshll.u32 %s2706_s21, 4  ;;  %s2822_s22 = int_to_ptr.vmem [resolvable:$true] %s339_s22 }
  0x13   : > { %s2817_s23 = sadd.s32 4294967295, %s2704_s20   ;;  %p1965_p0 = scmp.ge.s32.totalorder %s2704_s20, 1 }
  0x14   : > { %p3411_p1 = scmp.eq.s32.totalorder %s2817_s23, 0  ;;  %p318_p2 = scmp.lt.s32.totalorder %s2704_s20, 3 }
  0x15   : > { %s2707_s25 = smov [#allocation12]   ;;  %s3435_s6 = sld [smem:[#allocation31_spill]] }
  0x16   : > { %p2824_p3 = pnand %p1965_p0, %p318_p2  ;;  %s363_s26 = sshll.u32 %s2707_s25, 4  ;;  %s2837_s26 = int_to_ptr.vmem [resolvable:$true] %s363_s26 }
  0x18   : > { %s3433_s24 = scalar_select %p2824_p3, 1, 0 }
  0x19   : > { %p2249_p5 = pneg %p2824_p3 }
  0x1b   : > { %p2833_p6 = pnand %p2249_p5, %p3411_p1  ;;  %s2392_s30 = scalar_lea.hbm %s3435_s6, 512 }
  0x1c   : > { %p2393_p7 = scmp.ne.s32.totalorder %s3435_s6, %s2392_s30  ;;  %p2399_p11 = scmp.lt.u32.totalorder %s2392_s30, %s3435_s6 }
  0x1d   : > { %s3434_s27 = scalar_select %p2833_p6, 1, 0 }
  0x1e   : > { %p2847_p8 = pneg %p2833_p6 }
  0x20   : > { %s3436_s14 = scalar_select %p2847_p8, 1, 0 }
  0x21   : > { %p2395_p9 = pnand %p2847_p8, %p2393_p7 }
  0x23   : > { %p2396_p10 = pneg %p2395_p9 }
  0x25   : > { %p2401_p12 = pnand %p2399_p11, %p2396_p10 }
  0x27   : > { %2404 = shalt.err (!%p2401_p12)
}
  0x28   : > { %s2405_s21 = scalar_lea.vmem %s2822_s22, 512  ;;  %p2413_p5 = scmp.lt.s32.totalorder %s2822_s22, %s2822_s22 }
  0x29   : > { %p2406_p13 = scmp.ne.s32.totalorder %s2822_s22, %s2405_s21  ;;  %p2414_p4 = scmp.lt.s32.totalorder %s2405_s21, %s2405_s21 }
  0x2b   : > { %p2408_p0 = pnand %p2406_p13, %p2847_p8  ;;  %p2415_p7 = por %p2414_p4, %p2413_p5 }
  0x2d   : > { %p2409_p2 = pneg %p2408_p0 }
  0x2f   : > { %p2416_p9 = pnand %p2415_p7, %p2409_p2 }
  0x31   : > { %2419 = shalt.err (!%p2416_p9)
}
  0x32   : > { %s2708_s25 = smov 64   ;;  %s2709_s28 = smov 4  }
  0x33   : > { %2252 = dma.hbm_to_vmem [thread:$0]  (!%p2833_p6), %s3435_s6, 512, %s2822_s22, [#allocation10], %s2708_s25, %s2708_s25, %s2709_s28  }
  0x34   : > { %s3437_s8 = sld [smem:[#allocation32_spill]] }
  0x3a   : > { %s2420_s15 = scalar_lea.hbm %s3437_s8, 512 }
  0x3b   : > { %p2421_p4 = scmp.ne.s32.totalorder %s3437_s8, %s2420_s15  ;;  %p2427_p12 = scmp.lt.u32.totalorder %s2420_s15, %s3437_s8 }
  0x3d   : > { %p2423_p10 = pnand %p2421_p4, %p2847_p8 }
  0x3f   : > { %p2424_p11 = pneg %p2423_p10 }
  0x41   : > { %p2429_p13 = pnand %p2427_p12, %p2424_p11 }
  0x43   : > { %2432 = shalt.err (!%p2429_p13)
}
  0x44   : > { %s2433_s22 = scalar_lea.vmem %s2837_s26, 512  ;;  %p2441_p7 = scmp.lt.s32.totalorder %s2837_s26, %s2837_s26 }
  0x45   : > { %p2434_p0 = scmp.ne.s32.totalorder %s2837_s26, %s2433_s22  ;;  %p2442_p9 = scmp.lt.s32.totalorder %s2433_s22, %s2433_s22 }
  0x47   : > { %p2436_p2 = pnand %p2434_p0, %p2847_p8  ;;  %p2443_p4 = por %p2442_p9, %p2441_p7 }
  0x49   : > { %p2437_p5 = pneg %p2436_p2 }
  0x4b   : > { %p2444_p10 = pnand %p2443_p4, %p2437_p5 }
  0x4d   : > { %2447 = shalt.err (!%p2444_p10)
}
  0x4e   : > { %2258 = dma.hbm_to_vmem [thread:$0]  (!%p2833_p6), %s3437_s8, 512, %s2837_s26, [#allocation13], %s2708_s25, %s2708_s25, %s2709_s28  }
  0x4f   : > { %s1964_s29 = sadd.s32 4294967294, %s2704_s20   ;;  %s2893_s30 = sadd.s32 1, %s2704_s20  }
  0x50   : > { %3438 = sst [smem:[#allocation26_spill]] %s2893_s30  ;;  %s40_s12 = ssub.s32 %s2704_s20, %s2893_s30 }
  0x51   : > { %s43_s13 = sadd.s32 1, %s2700_s19  ;;  %p41_p11 = scmp.eq.s32.totalorder %s40_s12, 0 }
  0x52   : > { %p50_p12 = scmp.ne.s32.totalorder %s2700_s19, %s2696_s18  ;;  %p51_p13 = scmp.eq.s32.totalorder %s2704_s20, 0 }
  0x53   : > { %p56_p0 = scmp.ne.s32.totalorder %s2696_s18, %s2692_s17  ;;  %p279_p7 = scmp.eq.s32.totalorder %s2817_s23, 1 }
  0x54   : > { %s2904_s15 = scalar_select %p41_p11, %s2700_s19, %s43_s13  }
  0x55   : > { %p52_p2 = por %p51_p13, %p50_p12  ;;  %p2908_p5 = por %p3411_p1, %p56_p0 }
  0x56   : > { %3439 = sst [smem:[#allocation27_spill]] %s2904_s15  ;;  %p285_p9 = scmp.eq.s32.totalorder %s1964_s29, 1 }
  0x57   : > { %s3440_s16 = scalar_select %p2908_p5, 1, 0 }
  0x58   : > { %p2283_p4 = scmp.lt.s32.totalorder %s2704_s20, 2  ;;  %s2915_s26 = sand.u32 1, %s2700_s19  }
  0x59   : > { %p2917_p10 = por %p279_p7, %p50_p12  ;;  %p2921_p11 = por %p285_p9, %p56_p0 }
  0x5a   : > { %s3409_s21 = sshll.u32 %s2915_s26, 3  ;;  %s3410_s22 = sshll.u32 %s2704_s20, 7 }
  0x5b   : > { %s3441_s25 = scalar_select %p2917_p10, 1, 0 }
  0x5c   : > { %s3443_s28 = scalar_select %p2921_p11, 1, 0 }
  0x5d   : > { %3442 = sst [smem:[#allocation28_spill]] %s3441_s25  ;;  %p2927_p13 = pnand %p2283_p4, %p52_p2 }
  0x5e   : > { %3444 = sst [smem:[#allocation29_spill]] %s3443_s28  ;;  %s406_s11 = sand.u32 1, %s2704_s20  }
  0x5f   : > { %s3445_s10 = scalar_select %p2927_p13, 1, 0 }
  0x60   : > { %s3446_s1 = sld [smem:[#allocation30_spill]]  ;;  %s410_s6 = scalar_lea.vmem [#allocation6], %s3409_s21 }
  0x61   : > { %s417_s8 = sshll.u32 %s410_s6, 4  ;;  %s1975_s15 = sshll.u32 %s2915_s26, 4  ;;  %s2942_s8 = int_to_ptr.vmem [resolvable:$true] %s417_s8 }
  0x62   : > { %s2944_s19 = scalar_lea.sflag [#allocation7], %s406_s11  ;;  %p2950_p0 = pneg %p2927_p13 }
  0x64   : > { %s3447_s28 = scalar_select %p2950_p0, 1, 0 }
  0x66   : > { %s2937_s13 = scalar_lea.hbm %s3446_s1, %s3410_s22  ;;  %s2453_s6 = scalar_lea.hbm %s3446_s1, 256 }
  0x67   : > { %s2448_s30 = scalar_lea.hbm %s2937_s13, 128  ;;  %p2454_p9 = scmp.lt.u32.totalorder %s2937_s13, %s3446_s1 }
  0x68   : > { %p2449_p12 = scmp.ne.s32.totalorder %s2937_s13, %s2448_s30  ;;  %p2455_p4 = scmp.lt.u32.totalorder %s2453_s6, %s2448_s30 }
  0x69   : > { %p2457_p11 = scmp.lt.u32.totalorder %s2448_s30, %s2937_s13 }
  0x6a   : > { %p2451_p2 = pnand %p2950_p0, %p2449_p12  ;;  %p2456_p1 = por %p2455_p4, %p2454_p9 }
  0x6c   : > { %p2452_p7 = pneg %p2451_p2  ;;  %p2458_p10 = por %p2457_p11, %p2456_p1 }
  0x6e   : > { %p2459_p5 = pnand %p2458_p10, %p2452_p7 }
  0x70   : > { %2462 = shalt.err (!%p2459_p5)
}
  0x71   : > { %s2463_s11 = scalar_lea.vmem %s2942_s8, 128  ;;  %s2710_s29 = smov [#allocation6]  }
  0x72   : > { %p2464_p12 = scmp.ne.s32.totalorder %s2942_s8, %s2463_s11  ;;  %s2468_s12 = sshll.u32 %s2710_s29, 4  ;;  %s2469_s12 = int_to_ptr.vmem [resolvable:$false] %s2468_s12 }
  0x73   : > { %s2470_s21 = scalar_lea.vmem %s2469_s12, 256  ;;  %p2471_p6 = scmp.lt.s32.totalorder %s2942_s8, %s2469_s12 }
  0x74   : > { %p2466_p2 = pnand %p2464_p12, %p2950_p0  ;;  %p2472_p8 = scmp.lt.s32.totalorder %s2470_s21, %s2463_s11 }
  0x76   : > { %p2467_p3 = pneg %p2466_p2  ;;  %p2473_p9 = por %p2472_p8, %p2471_p6 }
  0x78   : > { %p2474_p4 = pnand %p2473_p9, %p2467_p3 }
  0x7a   : > { %2477 = shalt.err (!%p2474_p4)
}
  0x7b   : > { %2268 = dma.hbm_to_vmem [thread:$0]  (!%p2927_p13), %s2937_s13, 128, %s2942_s8, %s2944_s19  }
  0x7c   : > { %s428_s30 = scalar_lea.vmem [#allocation8], %s1975_s15  ;;  %s2711_s6 = smov [#allocation11]  }
  0x7d   : > { %s435_s22 = sshll.u32 %s428_s30, 4  ;;  %s353_s29 = sshll.u32 %s2711_s6, 4  ;;  %s2976_s22 = int_to_ptr.vmem [resolvable:$true] %s435_s22  ;;  %s354_s29 = int_to_ptr.vmem [resolvable:$true] %s353_s29 }
  0x7e   : > { %s2478_s21 = scalar_lea.hbm %s3398_s7, 16  ;;  %p3448_p3 = scmp.ne.s32.totalorder %s3436_s14, 0 }
  0x7f   : > { %p2479_p1 = scmp.ne.s32.totalorder %s3398_s7, %s2478_s21  ;;  %p2485_p5 = scmp.lt.u32.totalorder %s2478_s21, %s3398_s7 }
  0x81   : > { %p2481_p6 = pnand %p2479_p1, %p3448_p3 }
  0x83   : > { %p2482_p8 = pneg %p2481_p6 }
  0x85   : > { %p2487_p10 = pnand %p2485_p5, %p2482_p8 }
  0x87   : > { %2490 = shalt.err (!%p2487_p10)
}
  0x88   : > { %s2491_s15 = scalar_lea.vmem %s354_s29, 16  ;;  %s2498_s30 = scalar_lea.vmem %s354_s29, 32 }
  0x89   : > { %p2492_p11 = scmp.ne.s32.totalorder %s354_s29, %s2491_s15  ;;  %p2499_p2 = scmp.lt.s32.totalorder %s354_s29, %s354_s29 }
  0x8a   : > { %p2500_p9 = scmp.lt.s32.totalorder %s2498_s30, %s2491_s15 }
  0x8b   : > { %p2494_p7 = pnand %p2492_p11, %p3448_p3 }
  0x8c   : > { %p2501_p4 = por %p2500_p9, %p2499_p2 }
  0x8d   : > { %p2495_p12 = pneg %p2494_p7 }
  0x8f   : > { %p2502_p13 = pnand %p2501_p4, %p2495_p12 }
  0x91   : > { %2505 = shalt.err (!%p2502_p13)
}
  0x92   : > { %p3449_p1 = scmp.ne.s32.totalorder %s3434_s27, 0  ;;  %s2712_s6 = smov [#allocation14]  }
  0x93   : > { %s377_s11 = sshll.u32 %s2712_s6, 4  ;;  %s2506_s8 = scalar_lea.hbm %s3400_s9, 16  ;;  %s378_s11 = int_to_ptr.vmem [resolvable:$true] %s377_s11 }
  0x94   : > { %2255 = dma.hbm_to_vmem [thread:$0]  (!%p3449_p1), %s3398_s7, 16, %s354_s29, [#allocation10]  }
  0x95   : > { %p2507_p6 = scmp.ne.s32.totalorder %s3400_s9, %s2506_s8  ;;  %p2513_p5 = scmp.lt.u32.totalorder %s2506_s8, %s3400_s9 }
  0x97   : > { %p2509_p13 = pnand %p2507_p6, %p3448_p3 }
  0x99   : > { %p2510_p8 = pneg %p2509_p13 }
  0x9b   : > { %p2515_p10 = pnand %p2513_p5, %p2510_p8 }
  0x9d   : > { %2518 = shalt.err (!%p2515_p10)
}
  0x9e   : > { %s2519_s29 = scalar_lea.vmem %s378_s11, 16  ;;  %s2526_s1 = scalar_lea.vmem %s378_s11, 32 }
  0x9f   : > { %p2520_p11 = scmp.ne.s32.totalorder %s378_s11, %s2519_s29  ;;  %p2527_p2 = scmp.lt.s32.totalorder %s378_s11, %s378_s11 }
  0xa0   : > { %p2528_p9 = scmp.lt.s32.totalorder %s2526_s1, %s2519_s29 }
  0xa1   : > { %p2522_p7 = pnand %p2520_p11, %p3448_p3 }
  0xa2   : > { %p2529_p4 = por %p2528_p9, %p2527_p2 }
  0xa3   : > { %p2523_p12 = pneg %p2522_p7 }
  0xa5   : > { %p2530_p0 = pnand %p2529_p4, %p2523_p12 }
  0xa7   : > { %2533 = shalt.err (!%p2530_p0)
}
  0xa8   : > { %2261 = dma.hbm_to_vmem [thread:$0]  (!%p3449_p1), %s3400_s9, 16, %s378_s11, [#allocation13]  }
  0xa9   : > { %s3450_s14 = sshll.u32 %s2704_s20, 7  ;;  %s3451_s8 = sshll.u32 %s2915_s26, 3 }
  0xaa   : > { %s3019_s21 = scalar_lea.hbm %s3391_s0, %s3450_s14  ;;  %s392_s27 = scalar_lea.vmem [#allocation3], %s3451_s8 }
  0xab   : > { %s399_s13 = sshll.u32 %s392_s27, 4  ;;  %s2036_s15 = sshll.u32 %s2704_s20, 8  ;;  %s3023_s13 = int_to_ptr.vmem [resolvable:$true] %s399_s13 }
  0xac   : > { %s389_s30 = scalar_lea.sflag [#allocation4], %s2915_s26  ;;  %s2534_s29 = scalar_lea.hbm %s3019_s21, 128 }
  0xad   : > { %p2535_p0 = scmp.ne.s32.totalorder %s3019_s21, %s2534_s29  ;;  %p3452_p3 = scmp.ne.s32.totalorder %s3447_s28, 0 }
  0xae   : > { %s2539_s25 = scalar_lea.hbm %s3391_s0, 256  ;;  %p2540_p13 = scmp.lt.u32.totalorder %s3019_s21, %s3391_s0 }
  0xaf   : > { %p2537_p1 = pnand %p2535_p0, %p3452_p3  ;;  %p2541_p8 = scmp.lt.u32.totalorder %s2539_s25, %s2534_s29 }
  0xb0   : > { %p2543_p10 = scmp.lt.u32.totalorder %s2534_s29, %s3019_s21 }
  0xb1   : > { %p2538_p6 = pneg %p2537_p1  ;;  %p2542_p5 = por %p2541_p8, %p2540_p13 }
  0xb3   : > { %p2544_p11 = por %p2543_p10, %p2542_p5 }
  0xb5   : > { %p2545_p7 = pnand %p2544_p11, %p2538_p6 }
  0xb7   : > { %2548 = shalt.err (!%p2545_p7)
}
  0xb8   : > { %s2549_s26 = scalar_lea.vmem %s3023_s13, 128  ;;  %s2713_s6 = smov [#allocation3]  }
  0xb9   : > { %p2550_p12 = scmp.ne.s32.totalorder %s3023_s13, %s2549_s26  ;;  %s2554_s12 = sshll.u32 %s2713_s6, 4  ;;  %s2555_s12 = int_to_ptr.vmem [resolvable:$false] %s2554_s12 }
  0xba   : > { %s2556_s8 = scalar_lea.vmem %s2555_s12, 256  ;;  %p2557_p4 = scmp.lt.s32.totalorder %s3023_s13, %s2555_s12 }
  0xbb   : > { %p2552_p2 = pnand %p2550_p12, %p3452_p3  ;;  %p2558_p0 = scmp.lt.s32.totalorder %s2556_s8, %s2549_s26 }
  0xbd   : > { %p2553_p9 = pneg %p2552_p2  ;;  %p2559_p1 = por %p2558_p0, %p2557_p4 }
  0xbf   : > { %p2560_p13 = pnand %p2559_p1, %p2553_p9 }
  0xc1   : > { %2563 = shalt.err (!%p2560_p13)
}
  0xc2   : > { %p3453_p6 = scmp.ne.s32.totalorder %s3445_s10, 0  ;;  %s3053_s11 = scalar_lea.hbm %s3393_s2, %s2036_s15 }
  0xc3   : > { %s2564_s1 = scalar_lea.hbm %s3053_s11, 256  ;;  %s2569_s14 = scalar_lea.hbm %s3393_s2, 512 }
  0xc4   : > { %2265 = dma.hbm_to_vmem [thread:$0]  (!%p3453_p6), %s3019_s21, 128, %s3023_s13, %s389_s30  }
  0xc5   : > { %p2565_p8 = scmp.ne.s32.totalorder %s3053_s11, %s2564_s1  ;;  %p2570_p11 = scmp.lt.u32.totalorder %s3053_s11, %s3393_s2 }
  0xc6   : > { %p2571_p7 = scmp.lt.u32.totalorder %s2569_s14, %s2564_s1  ;;  %p2573_p2 = scmp.lt.u32.totalorder %s2564_s1, %s3053_s11 }
  0xc7   : > { %p2567_p5 = pnand %p2565_p8, %p3452_p3 }
  0xc8   : > { %p2572_p12 = por %p2571_p7, %p2570_p11 }
  0xc9   : > { %p2568_p10 = pneg %p2567_p5 }
  0xca   : > { %p2574_p9 = por %p2573_p2, %p2572_p12 }
  0xcc   : > { %p2575_p4 = pnand %p2574_p9, %p2568_p10 }
  0xce   : > { %2578 = shalt.err (!%p2575_p4)
}
  0xcf   : > { %s2579_s15 = scalar_lea.vmem %s2976_s22, 256  ;;  %s2714_s30 = smov [#allocation8]  }
  0xd0   : > { %p2580_p0 = scmp.ne.s32.totalorder %s2976_s22, %s2579_s15  ;;  %s2584_s26 = sshll.u32 %s2714_s30, 4  ;;  %s2585_s26 = int_to_ptr.vmem [resolvable:$false] %s2584_s26 }
  0xd1   : > { %s2586_s6 = scalar_lea.vmem %s2585_s26, 512  ;;  %p2587_p8 = scmp.lt.s32.totalorder %s2976_s22, %s2585_s26 }
  0xd2   : > { %p2582_p1 = pnand %p2580_p0, %p3452_p3  ;;  %p2588_p5 = scmp.lt.s32.totalorder %s2586_s6, %s2579_s15 }
  0xd4   : > { %p2583_p13 = pneg %p2582_p1  ;;  %p2589_p11 = por %p2588_p5, %p2587_p8 }
  0xd6   : > { %p2590_p7 = pnand %p2589_p11, %p2583_p13 }
  0xd8   : > { %2593 = shalt.err (!%p2590_p7)
}
  0xd9   : > { %s2715_s12 = smov 128   ;;  %s2716_s8 = smov 8  }
  0xda   : > { %2271 = dma.hbm_to_vmem [thread:$0]  (!%p3453_p6), %s3053_s11, 256, %s2976_s22, %s2944_s19, %s2715_s12, %s2715_s12, %s2716_s8  }
  0xdb   : > { %p3454_p3 = scmp.ne.s32.totalorder %s3433_s24, 0 }
  0xdc   : > { %s3080_s28 = sand.u32 (!%p3454_p3), 1, %s2696_s18   ;;  %p3455_p10 = scmp.ne.s32.totalorder (!%p3454_p3), %s3440_s16, 0 }
  0xdd   : > { %447 = sbr.rel (%p3454_p3) target bundleno = 1932 (0x78c), region = 60  ;;  %s3083_s27 = sshll.u32 (!%p3454_p3), %s3080_s28, 3 }
  0xde   : > { %s450_s29 = scalar_lea.sflag (!%p3454_p3), [#allocation4], %s3080_s28  ;;  %s453_s1 = scalar_lea.vmem (!%p3454_p3), [#allocation3], %s3083_s27 }
  0xe4   : > { %2667 = dma.done.wait (%p3455_p10), %s450_s29, 128  }
  0xe5   : > { %2669 = vsyncadd (%p3455_p10), %s450_s29, 4294967168  ;;  %s458_s19 = sand.u32 1, %s2817_s23   ;;  %s462_s10 = scalar_lea.vmem [#allocation6], %s3083_s27 }
  0xe6   : > { %s459_s24 = scalar_lea.sflag [#allocation7], %s458_s19 }
  0xe7   : > { %2671 = dma.done.wait (%p3455_p10), %s459_s24, 384  }
  0xe8   : > { %2673 = vsyncadd (%p3455_p10), %s459_s24, 4294966912  ;;  %s1981_s22 = sshll.u32 %s3080_s28, 4  ;;  %p3456_p6 = scmp.eq.s32.totalorder %s2817_s23, 0 }
  0xe9   : > { %s471_s11 = scalar_lea.vmem [#allocation8], %s1981_s22 }
  0xea   : > { %2675 = dma.done.wait (%p3456_p6), [#allocation10], 528   ;;  %p3457_p12 = pmov %p3456_p6 }
  0xeb   : > { %p3458_p2 = pmov %p3456_p6 }
  0xec   : > { %2677 = vsyncadd (%p3457_p12), [#allocation10], 4294966768 }
  0xed   : > { %2679 = dma.done.wait (%p3458_p2), [#allocation13], 528   ;;  %p3459_p9 = pmov %p3458_p2 }
  0xee   : > { %v2717_v0 = vmov 0.0   ;;  %vm2718_vm0 = vmmov 0   ;;  %v542_v1 = vld [vmem:[%s453_s1] sm:$0xff]  ;;  %v543_v2 = vld [vmem:[%s462_s10] sm:$0xff]  ;;  %vm545_vm1 = vcmask 523264   ;;  %vm735_vm2 = vcmask 64512  }
  0xef   : > { %2681 = vsyncadd (%p3459_p9), [#allocation13], 4294966768  ;;  %2103 = vmatprep.subr.bf16.mxu1 %v2717_v0  ;;  %2111 = vmatprep.mubr.msk.bf16.mxu1 %vm2718_vm0, %v2717_v0  ;;  %v3112_v3 = vadd.f32 %v543_v2, %v542_v1  ;;  %v2346_v4 = vld [vmem:[#allocation9] sm:$0xff]   ;;  %v2347_v6 = vld [vmem:[#allocation9 + $0x8] sm:$0xff]   ;;  %s2719_s12 = smov 120   ;;  %s2720_s8 = smov 112  }
  0xf0   : > { %2091 = vmatprep.subr.bf16.mxu0 %v2717_v0  ;;  %2099 = vmatprep.mubr.msk.bf16.mxu0 %vm2718_vm0, %v2717_v0  ;;  %v2348_v8 = vld [vmem:[#allocation9 + $0x10] sm:$0xff]   ;;  %v2349_v9 = vld [vmem:[#allocation9 + $0x18] sm:$0xff]   ;;  %v2351_v14 = vld [vmem:[%s3395_s4 + $0x8] sm:$0xff]   ;;  %s2721_s29 = smov 88   ;;  %s2722_s1 = smov 80   ;;  %vm782_vm3 = vcmask 130048  }
  0xf1   : > { %v547_v5 = vmul.f32 %v3112_v3, %v3112_v3  ;;  %2104 = vmatpush3.bf16.msra.mxu1 %v2346_v4  ;;  %v647_v10 = vld [vmem:[%s471_s11] sm:$0xff]  ;;  %v648_v11 = vld [vmem:[%s471_s11 + $0x8] sm:$0xff]  ;;  %s2723_s19 = smov 72   ;;  %s2724_s22 = smov 104   ;;  %vm843_vm4 = vcmask 60416   ;;  %vm961_vm5 = vcmask 126016  }
  0xf2   : > { %2105 = vmatprep.subr.bf16.mxu1 %v2717_v0  ;;  %v649_v12 = vpack.c.bf16 %v648_v11, %v647_v10  ;;  %v2350_v13 = vld [vmem:[%s3395_s4] sm:$0xff]   ;;  %v2352_v15 = vld [vmem:[%s3395_s4 + $0x10] sm:$0xff]   ;;  %v2353_v16 = vld [vmem:[%s3395_s4 + $0x18] sm:$0xff]   ;;  %s2725_s11 = smov 96   ;;  %s2726_s16 = smov 56   ;;  %vm1078_vm6 = vcmask 191616  }
  0xf3   : > { %v548_v7 = vsel %vm545_vm1, %v547_v5, 0.0  ;;  %2092 = vmatpush3.bf16.msra.mxu0 %v2350_v13  ;;  %v1988_v21 = vld [vmem:[%s3394_s3] ss:$0 sm:$0xff]  ;;  %v1995_v25 = vld [vmem:[#allocation11] ss:$0 sm:$0xff]  ;;  %s2727_s25 = smov 64  }
  0xf4   : > { %549 = vadd.xlane.f32.xlu0 %v548_v7  ;;  %2093 = vmatprep.subr.bf16.mxu0 %v2717_v0  ;;  %v1989_v36 = vld [vmem:[%s3396_s5] ss:$0 sm:$0xff]  ;;  %s2728_s17 = smov 48   ;;  %s2729_s14 = smov 40   ;;  %vm1195_vm7 = vcmask 257216   ;;  %vm1312_vm8 = vcmask 322816  }
  0xf5   : > { %2106 = vmatpush3.bf16.msra.mxu1 %v2347_v6  ;;  %s2730_s21 = smov 24   ;;  %s2731_s13 = smov 16   ;;  %vm1429_vm9 = vcmask 388416   ;;  %vm1546_vm10 = vcmask 454016   ;;  %vm1663_vm11 = vcmask 519616  }
  0xf6   : > { %2107 = vmatprep.subr.bf16.mxu1 %v2717_v0  ;;  %s2732_s15 = smov 8   ;;  %s2733_s30 = smov 32  }
  0xf7   : > { %2094 = vmatpush3.bf16.msra.mxu0 %v2351_v14  ;;  %s3460_s26 = sld [smem:[#allocation28_spill]]  ;;  %s2032_s6 = sshll.u32 %s2817_s23, 7 }
  0xf8   : > { %2095 = vmatprep.subr.bf16.mxu0 %v2717_v0  ;;  %s1755_s10 = scalar_lea.sflag [#allocation17], %s3080_s28 }
  0xf9   : > { %2108 = vmatpush3.bf16.msra.mxu1 %v2348_v8 }
  0xfa   : > { %2109 = vmatprep.subr.bf16.mxu1 %v2717_v0 }
  0xfb   : > { %2096 = vmatpush3.bf16.msra.mxu0 %v2352_v15 }
  0xfc   : > { %2097 = vmatprep.subr.bf16.mxu0 %v2717_v0 }
  0xfd   : > { %2110 = vmatpush3.bf16.msra.mxu1 %v2349_v9  ;;  %p3462_p0 = scmp.ne.s32.totalorder %s3460_s26, 0 }
  0xfe   : > { %2115 = vmatprep.subr.bf16.mxu1 %v2717_v0 }
  0xff   : > { %2098 = vmatpush3.bf16.msra.mxu0 %v2353_v16 }
 0x100   : > { %2112 = vmatmul.mubr.msk.bf16.vlgmr.msra.gmra.mrb[0].mxu1 %vm545_vm1, %v649_v12  ;;  %2127 = vmatprep.subr.bf16.mxu0 %v2717_v0 }
 0x101   : > { %2117 = vmatprep.mubr.msk.bf16.mxu1 %vm2718_vm0, %v2717_v0 }
 0x181   : > { %v550_v17 = vpop.xlane.xlu0 %549 }
 0x182   : > { %v552_v18 = vmul.f32 0.015625, %v550_v17 }
 0x184   : > { %v553_v19 = vadd.f32 1e-05, %v552_v18 }
 0x186   : > { %2358 = vrsqrt.f32 %v553_v19 }
 0x190   : > { %v2359_v20 = vpop.eup %2358 }
 0x191   : > { %v555_v22 = vmul.f32 %v2359_v20, %v3112_v3 }
 0x193   : > { %v563_v23 = vmul.f32 %v1988_v21, %v555_v22 }
 0x195   : > { %v564_v24 = vpack.c.bf16 %v563_v23, %v563_v23 }
 0x197   : > { %2100 = vmatmul.mubr.msk.bf16.vlgmr.msra.gmra.mrb[0].mxu0 %vm545_vm1, %v564_v24 }
 0x198   : > { %2129 = vmatprep.mubr.msk.bf16.mxu0 %vm2718_vm0, %v2717_v0 }
 0x1d3   : > { %v726_v26 = vpop.f32.mrb[0].mxu1 }
 0x1d4   : > { %v727_v27 = vadd.f32 %v1995_v25, %v726_v26  ;;  %v2113_v28 = vpop.f32.mrb[1].mxu1 }
 0x1d5   : > { %v729_v29 = vpop.f32.mrb[2].mxu1 }
 0x1d6   : > { %v730_v30 = vadd.f32 %v1995_v25, %v729_v29  ;;  %v2114_v31 = vpop.f32.mrb[3].mxu1 }
 0x1d8   : > { %v3147_v32 = vpack.c.bf16 %v730_v30, %v727_v27 }
 0x1da   : > { %848 = vrot.lane.b32.xlu0 %v3147_v32, %s2719_s12  ;;  %965 = vrot.lane.b32.xlu1 %v3147_v32, %s2720_s8  ;;  %v740_v33 = vsel %vm735_vm2, %v3147_v32, 0 }
 0x1db   : > { %2116 = vmatpush3.bf16.xpose.msra.mxu1 %v740_v33 }
 0x1dc   : > { %2121 = vmatprep.subr.bf16.mxu1 %v2717_v0 }
 0x1de   : > { %1316 = vrot.lane.b32.xlu0 %v3147_v32, %s2721_s29 }
 0x1e2   : > { %1433 = vrot.lane.b32.xlu0 %v3147_v32, %s2722_s1 }
 0x1e6   : > { %1550 = vrot.lane.b32.xlu0 %v3147_v32, %s2723_s19 }
 0x24c   : > { %v849_v34 = vpop.permute.xlu0 %848  ;;  %v966_v43 = vpop.permute.xlu1 %965 }
 0x24d   : > { %v854_v35 = vsel %vm735_vm2, %v849_v34, 0  ;;  %v971_v45 = vsel %vm735_vm2, %v966_v43, 0 }
 0x24e   : > { %2128 = vmatpush3.bf16.xpose.msra.mxu0 %v854_v35 }
 0x24f   : > { %2139 = vmatprep.subr.bf16.mxu0 %v2717_v0 }
 0x250   : > { %v1317_v52 = vpop.permute.xlu0 %1316 }
 0x251   : > { %v1322_v54 = vsel %vm735_vm2, %v1317_v52, 0 }
 0x254   : > { %v1434_v55 = vpop.permute.xlu0 %1433 }
 0x255   : > { %v1439_v57 = vsel %vm735_vm2, %v1434_v55, 0 }
 0x258   : > { %v1551_v58 = vpop.permute.xlu0 %1550 }
 0x259   : > { %v1556_v60 = vsel %vm735_vm2, %v1551_v58, 0 }
 0x26a   : > { %v641_v37 = vpop.f32.mrb[0].mxu0 }
 0x26b   : > { %v642_v38 = vadd.f32 %v1989_v36, %v641_v37  ;;  %v2101_v39 = vpop.f32.mrb[1].mxu0 }
 0x26c   : > { %v644_v40 = vpop.f32.mrb[2].mxu0 }
 0x26d   : > { %v733_v41 = vpack.c.bf16 %v642_v38, %v642_v38  ;;  %v2102_v42 = vpop.f32.mrb[3].mxu0 }
 0x26f   : > { %846 = vrot.lane.b32.xlu1 %v733_v41, %s2719_s12  ;;  %2118 = vmatmul.mubr.msk.bf16.vlgmr.msra.gmra.mrb[4].mxu1 %vm735_vm2, %v733_v41  ;;  %s540_s12 = scalar_lea.vmem [#allocation16], %s3083_s27 }
 0x270   : > { %2123 = vmatprep.mubr.msk.bf16.mxu1 %vm2718_vm0, %v2717_v0  ;;  %546 = vst.msk [vmem:[%s540_s12] sm:$0xff] %vm545_vm1, %v3112_v3  ;;  %s1781_s24 = sshll.u32 %s540_s12, 4  ;;  %s1782_s24 = int_to_ptr.vmem [resolvable:$true] %s1781_s24 }
 0x273   : > { %1082 = vrot.lane.b32.xlu1 %v3147_v32, %s2724_s22 }
 0x277   : > { %963 = vrot.lane.b32.xlu1 %v733_v41, %s2720_s8 }
 0x27b   : > { %1080 = vrot.lane.b32.xlu1 %v733_v41, %s2724_s22  ;;  %s2594_s22 = scalar_lea.vmem %s1782_s24, 128 }
 0x27c   : > { %p2595_p4 = scmp.ne.s32.totalorder %s1782_s24, %s2594_s22 }
 0x27e   : > { %p2596_p1 = pnand %p2595_p4, %p3462_p0 }
 0x27f   : > { %1199 = vrot.lane.b32.xlu1 %v3147_v32, %s2725_s11 }
 0x280   : > { %p2597_p13 = pneg %p2596_p1 }
 0x283   : > { %1197 = vrot.lane.b32.xlu1 %v733_v41, %s2725_s11  ;;  %s2734_s11 = smov [#allocation16]  }
 0x287   : > { %1314 = vrot.lane.b32.xlu1 %v733_v41, %s2721_s29 }
 0x28b   : > { %1431 = vrot.lane.b32.xlu1 %v733_v41, %s2722_s1  ;;  %s3461_s1 = sld [smem:[#allocation34_spill]] }
 0x28f   : > { %1548 = vrot.lane.b32.xlu1 %v733_v41, %s2723_s19 }
 0x291   : > { %s3320_s19 = scalar_lea.hbm %s3461_s1, %s2032_s6 }
 0x2e1   : > { %v847_v44 = vpop.permute.xlu1 %846 }
 0x2e2   : > { %2130 = vmatmul.mubr.msk.bf16.vlgmr.msra.gmra.mrb[4].mxu0 %vm735_vm2, %v847_v44 }
 0x2e3   : > { %2140 = vmatpush3.bf16.xpose.msra.mxu0 %v971_v45  ;;  %2141 = vmatprep.mubr.msk.bf16.mxu0 %vm2718_vm0, %v2717_v0 }
 0x2e4   : > { %2151 = vmatprep.subr.bf16.mxu0 %v2717_v0 }
 0x2e5   : > { %v1083_v46 = vpop.permute.xlu1 %1082 }
 0x2e6   : > { %v1088_v48 = vsel %vm735_vm2, %v1083_v46, 0 }
 0x2e9   : > { %v964_v47 = vpop.permute.xlu1 %963 }
 0x2ea   : > { %2142 = vmatmul.mubr.msk.bf16.vlgmr.msra.gmra.mrb[8].mxu0 %vm735_vm2, %v964_v47 }
 0x2eb   : > { %2152 = vmatpush3.bf16.xpose.msra.mxu0 %v1088_v48  ;;  %2153 = vmatprep.mubr.msk.bf16.mxu0 %vm2718_vm0, %v2717_v0 }
 0x2ec   : > { %2163 = vmatprep.subr.bf16.mxu0 %v2717_v0 }
 0x2ed   : > { %v1081_v49 = vpop.permute.xlu1 %1080 }
 0x2f1   : > { %v1200_v50 = vpop.permute.xlu1 %1199 }
 0x2f2   : > { %v1205_v51 = vsel %vm735_vm2, %v1200_v50, 0  ;;  %2154 = vmatmul.mubr.msk.bf16.vlgmr.msra.gmra.mrb[12].mxu0 %vm735_vm2, %v1081_v49 }
 0x2f3   : > { %2164 = vmatpush3.bf16.xpose.msra.mxu0 %v1205_v51  ;;  %2165 = vmatprep.mubr.msk.bf16.mxu0 %vm2718_vm0, %v2717_v0 }
 0x2f4   : > { %2175 = vmatprep.subr.bf16.mxu0 %v2717_v0 }
 0x2f5   : > { %v1198_v53 = vpop.permute.xlu1 %1197 }
 0x2f9   : > { %v1315_v56 = vpop.permute.xlu1 %1314 }
 0x2fa   : > { %2166 = vmatmul.mubr.msk.bf16.vlgmr.msra.gmra.mrb[16].mxu0 %vm735_vm2, %v1198_v53 }
 0x2fb   : > { %2176 = vmatpush3.bf16.xpose.msra.mxu0 %v1322_v54  ;;  %2177 = vmatprep.mubr.msk.bf16.mxu0 %vm2718_vm0, %v2717_v0 }
 0x2fc   : > { %2187 = vmatprep.subr.bf16.mxu0 %v2717_v0 }
 0x2fd   : > { %v1432_v59 = vpop.permute.xlu1 %1431 }
 0x301   : > { %v1549_v61 = vpop.permute.xlu1 %1548 }
 0x302   : > { %2178 = vmatmul.mubr.msk.bf16.vlgmr.msra.gmra.mrb[20].mxu0 %vm735_vm2, %v1315_v56 }
 0x303   : > { %2188 = vmatpush3.bf16.xpose.msra.mxu0 %v1439_v57  ;;  %2189 = vmatprep.mubr.msk.bf16.mxu0 %vm2718_vm0, %v2717_v0 }
 0x304   : > { %2199 = vmatprep.subr.bf16.mxu0 %v2717_v0 }
 0x30a   : > { %2190 = vmatmul.mubr.msk.bf16.vlgmr.msra.gmra.mrb[24].mxu0 %vm735_vm2, %v1432_v59 }
 0x30b   : > { %2200 = vmatpush3.bf16.xpose.msra.mxu0 %v1556_v60  ;;  %2201 = vmatprep.mubr.msk.bf16.mxu0 %vm2718_vm0, %v2717_v0 }
 0x30c   : > { %2211 = vmatprep.subr.bf16.mxu0 %v2717_v0 }
 0x312   : > { %2202 = vmatmul.mubr.msk.bf16.vlgmr.msra.gmra.mrb[28].mxu0 %vm735_vm2, %v1549_v61 }
 0x313   : > { %2219 = vmatprep.mubr.msk.bf16.mxu0 %vm2718_vm0, %v2717_v0 }
 0x342   : > { %v776_v62 = vpop.f32.mrb[4].mxu1 }
 0x343   : > { %v2119_v63 = vpop.f32.mrb[5].mxu1  ;;  %v783_v1 = vsel %vm782_vm3, %v776_v62, -inf }
 0x344   : > { %784 = vmax.xlane.f32.xlu0 %v783_v1  ;;  %v779_v2 = vpop.f32.mrb[6].mxu1 }
 0x345   : > { %v2120_v4 = vpop.f32.mrb[7].mxu1 }
 0x3b5   : > { %v890_v5 = vpop.f32.mrb[4].mxu0 }
 0x3b6   : > { %v2131_v6 = vpop.f32.mrb[5].mxu0  ;;  %v896_v7 = vsel %vm782_vm3, %v890_v5, -inf }
 0x3b7   : > { %897 = vmax.xlane.f32.xlu1 %v896_v7  ;;  %v893_v8 = vpop.f32.mrb[6].mxu0 }
 0x3b8   : > { %v2132_v9 = vpop.f32.mrb[7].mxu0 }
 0x3bd   : > { %v1007_v10 = vpop.f32.mrb[8].mxu0 }
 0x3be   : > { %v2143_v11 = vpop.f32.mrb[9].mxu0  ;;  %v1013_v12 = vsel %vm782_vm3, %v1007_v10, -inf }
 0x3bf   : > { %1014 = vmax.xlane.f32.xlu0 %v1013_v12  ;;  %v1010_v13 = vpop.f32.mrb[10].mxu0 }
 0x3c0   : > { %v2144_v14 = vpop.f32.mrb[11].mxu0 }
 0x3c5   : > { %v3203_v15 = vpop.f32.mrb[12].mxu0 }
 0x3c6   : > { %v2155_v16 = vpop.f32.mrb[13].mxu0  ;;  %v1130_v17 = vsel %vm782_vm3, %v3203_v15, -inf }
 0x3c7   : > { %1131 = vmax.xlane.f32.xlu0 %v1130_v17  ;;  %v1127_v18 = vpop.f32.mrb[14].mxu0 }
 0x3c8   : > { %v2156_v19 = vpop.f32.mrb[15].mxu0 }
 0x3cd   : > { %v3207_v20 = vpop.f32.mrb[16].mxu0 }
 0x3ce   : > { %v2167_v21 = vpop.f32.mrb[17].mxu0  ;;  %v1247_v22 = vsel %vm782_vm3, %v3207_v20, -inf }
 0x3cf   : > { %1248 = vmax.xlane.f32.xlu1 %v1247_v22  ;;  %v1244_v23 = vpop.f32.mrb[18].mxu0 }
 0x3d0   : > { %v2168_v24 = vpop.f32.mrb[19].mxu0 }
 0x3d1   : > { %v785_v40 = vpop.xlane.xlu0 %784 }
 0x3d2   : > { %v786_v41 = vsub.f32 %v776_v62, %v785_v40 }
 0x3d4   : > { %v787_v42 = vmul.f32 1.442695, %v786_v41 }
 0x3d5   : > { %v1358_v25 = vpop.f32.mrb[20].mxu0 }
 0x3d6   : > { %v2179_v26 = vpop.f32.mrb[21].mxu0  ;;  %v1364_v27 = vsel %vm782_vm3, %v1358_v25, -inf  ;;  %2360 = vpow2.f32 %v787_v42 }
 0x3d7   : > { %1365 = vmax.xlane.f32.xlu0 %v1364_v27  ;;  %v1361_v28 = vpop.f32.mrb[22].mxu0 }
 0x3d8   : > { %v2180_v29 = vpop.f32.mrb[23].mxu0 }
 0x3dd   : > { %v1475_v30 = vpop.f32.mrb[24].mxu0 }
 0x3de   : > { %v2191_v31 = vpop.f32.mrb[25].mxu0  ;;  %v1481_v33 = vsel %vm782_vm3, %v1475_v30, -inf }
 0x3df   : > { %1482 = vmax.xlane.f32.xlu1 %v1481_v33  ;;  %v1478_v34 = vpop.f32.mrb[26].mxu0 }
 0x3e0   : > { %v2192_v35 = vpop.f32.mrb[27].mxu0  ;;  %v3220_v44 = vpop.eup %2360 }
 0x3e1   : > { %v789_v45 = vsel %vm782_vm3, %v3220_v44, 0.0 }
 0x3e5   : > { %v3213_v36 = vpop.f32.mrb[28].mxu0 }
 0x3e6   : > { %v2203_v37 = vpop.f32.mrb[29].mxu0  ;;  %v1598_v43 = vsel %vm782_vm3, %v3213_v36, -inf }
 0x3e7   : > { %v1595_v38 = vpop.f32.mrb[30].mxu0 }
 0x3e8   : > { %v2204_v39 = vpop.f32.mrb[31].mxu0 }
 0x3ed   : > { %908 = vrot.lane.b32.xlu0 %v3147_v32, %s2726_s16 }
 0x3f0   : > { %796 = vrot.lane.b32.xlu1 %v3147_v32, %s2727_s25 }
 0x40c   : > { %1599 = vmax.xlane.f32.xlu0 %v1598_v43 }
 0x414   : > { %790 = vadd.xlane.f32.xlu1 %v789_v45 }
 0x444   : > { %v898_v46 = vpop.xlane.xlu1 %897 }
 0x445   : > { %v899_v47 = vsub.f32 %v890_v5, %v898_v46 }
 0x447   : > { %v900_v48 = vmul.f32 1.442695, %v899_v47 }
 0x449   : > { %2362 = vpow2.f32 %v900_v48 }
 0x44c   : > { %v1015_v49 = vpop.xlane.xlu0 %1014 }
 0x44d   : > { %v1016_v50 = vsub.f32 %v1007_v10, %v1015_v49 }
 0x44f   : > { %v1017_v51 = vmul.f32 1.442695, %v1016_v50 }
 0x451   : > { %2364 = vpow2.f32 %v1017_v51 }
 0x453   : > { %v3224_v52 = vpop.eup %2362 }
 0x454   : > { %v902_v53 = vsel %vm782_vm3, %v3224_v52, 0.0  ;;  %v1132_v59 = vpop.xlane.xlu0 %1131 }
 0x455   : > { %903 = vadd.xlane.f32.xlu0 %v902_v53  ;;  %v1133_v60 = vsub.f32 %v3203_v15, %v1132_v59 }
 0x457   : > { %v1134_v61 = vmul.f32 1.442695, %v1133_v60 }
 0x459   : > { %2366 = vpow2.f32 %v1134_v61 }
 0x45b   : > { %v3228_v54 = vpop.eup %2364 }
 0x45c   : > { %v1019_v55 = vsel %vm782_vm3, %v3228_v54, 0.0  ;;  %v1249_v56 = vpop.xlane.xlu1 %1248 }
 0x45d   : > { %1020 = vadd.xlane.f32.xlu1 %v1019_v55  ;;  %v1250_v62 = vsub.f32 %v3207_v20, %v1249_v56 }
 0x45f   : > { %v1251_v2 = vmul.f32 1.442695, %v1250_v62 }
 0x461   : > { %2368 = vpow2.f32 %v1251_v2 }
 0x463   : > { %v2367_v7 = vpop.eup %2366 }
 0x464   : > { %v1366_v63 = vpop.xlane.xlu0 %1365  ;;  %v1136_v8 = vsel %vm782_vm3, %v2367_v7, 0.0 }
 0x465   : > { %v1367_v1 = vsub.f32 %v1358_v25, %v1366_v63 }
 0x467   : > { %v1368_v5 = vmul.f32 1.442695, %v1367_v1 }
 0x468   : > { %v909_v15 = vpop.permute.xlu0 %908 }
 0x469   : > { %2370 = vpow2.f32 %v1368_v5 }
 0x46b   : > { %1025 = vrot.lane.b32.xlu0 %v3147_v32, %s2728_s17  ;;  %v3240_v9 = vpop.eup %2368 }
 0x46c   : > { %v1483_v57 = vpop.xlane.xlu1 %1482  ;;  %v1253_v11 = vsel %vm782_vm3, %v3240_v9, 0.0 }
 0x46d   : > { %v1484_v4 = vsub.f32 %v1475_v30, %v1483_v57 }
 0x46e   : > { %1142 = vrot.lane.b32.xlu1 %v3147_v32, %s2729_s14 }
 0x46f   : > { %v1485_v6 = vmul.f32 1.442695, %v1484_v4 }
 0x470   : > { %v797_v58 = vpop.permute.xlu1 %796 }
 0x471   : > { %2122 = vmatpush3.bf16.msra.mxu1 %v797_v58  ;;  %2372 = vpow2.f32 %v1485_v6 }
 0x472   : > { %2133 = vmatprep.subr.bf16.mxu1 %v2717_v0 }
 0x473   : > { %v3242_v10 = vpop.eup %2370 }
 0x474   : > { %v1370_v14 = vsel %vm782_vm3, %v3242_v10, 0.0 }
 0x47b   : > { %v3246_v12 = vpop.eup %2372 }
 0x47c   : > { %v1487_v13 = vsel %vm782_vm3, %v3246_v12, 0.0 }
 0x48a   : > { %1137 = vadd.xlane.f32.xlu0 %v1136_v8 }
 0x48e   : > { %1254 = vadd.xlane.f32.xlu0 %v1253_v11 }
 0x492   : > { %1488 = vadd.xlane.f32.xlu0 %v1487_v13  ;;  %1371 = vadd.xlane.f32.xlu1 %v1370_v14 }
 0x499   : > { %v1600_v16 = vpop.xlane.xlu0 %1599 }
 0x49a   : > { %v1601_v17 = vsub.f32 %v3213_v36, %v1600_v16 }
 0x49c   : > { %v1602_v18 = vmul.f32 1.442695, %v1601_v17 }
 0x49e   : > { %2374 = vpow2.f32 %v1602_v18 }
 0x4a1   : > { %v791_v19 = vpop.xlane.xlu1 %790 }
 0x4a2   : > { %2376 = vrcp.f32 %v791_v19 }
 0x4a3   : > { %1376 = vrot.lane.b32.xlu1 %v3147_v32, %s2730_s21 }
 0x4a7   : > { %1493 = vrot.lane.b32.xlu1 %v3147_v32, %s2731_s13 }
 0x4a8   : > { %v3257_v20 = vpop.eup %2374 }
 0x4a9   : > { %v1604_v21 = vsel %vm782_vm3, %v3257_v20, 0.0 }
 0x4aa   : > { %1605 = vadd.xlane.f32.xlu0 %v1604_v21 }
 0x4ab   : > { %1610 = vrot.lane.b32.xlu1 %v3147_v32, %s2732_s15 }
 0x4ac   : > { %v2377_v22 = vpop.eup %2376 }
 0x4ad   : > { %v793_v23 = vmul.f32 %v2377_v22, %v3220_v44  ;;  %v2354_v22 = vld [vmem:[#allocation12] sm:$0xff]  }
 0x4ae   : > { %2212 = vmatpush3.bf16.msra.mxu0 %v2354_v22 }
 0x4af   : > { %v794_v24 = vpack.c.bf16 %v793_v23, %v793_v23  ;;  %2213 = vmatprep.subr.bf16.mxu0 %v2717_v0 }
 0x4b1   : > { %2124 = vmatmul.mubr.msk.bf16.vlgmr.msra.gmra.mrb[8].mxu1 %vm782_vm3, %v794_v24  ;;  %v2355_v24 = vld [vmem:[#allocation12 + $0x8] sm:$0xff]  }
 0x4b2   : > { %2134 = vmatpush3.bf16.msra.mxu1 %v909_v15  ;;  %2135 = vmatprep.mubr.msk.bf16.mxu1 %vm2718_vm0, %v2717_v0 }
 0x4b3   : > { %2145 = vmatprep.subr.bf16.mxu1 %v2717_v0  ;;  %2214 = vmatpush3.bf16.msra.mxu0 %v2355_v24 }
 0x4b4   : > { %2215 = vmatprep.subr.bf16.mxu0 %v2717_v0 }
 0x4c0   : > { %1259 = vrot.lane.b32.xlu0 %v3147_v32, %s2733_s30 }
 0x4e2   : > { %v904_v25 = vpop.xlane.xlu0 %903 }
 0x4e3   : > { %2378 = vrcp.f32 %v904_v25 }
 0x4e6   : > { %v1026_v30 = vpop.permute.xlu0 %1025 }
 0x4ea   : > { %v1021_v26 = vpop.xlane.xlu1 %1020 }
 0x4eb   : > { %2380 = vrcp.f32 %v1021_v26 }
 0x4ed   : > { %v2379_v27 = vpop.eup %2378 }
 0x4ee   : > { %v906_v28 = vmul.f32 %v2379_v27, %v3224_v52  ;;  %v1143_v34 = vpop.permute.xlu1 %1142 }
 0x4f0   : > { %v907_v29 = vpack.c.bf16 %v906_v28, %v906_v28 }
 0x4f2   : > { %2136 = vmatmul.mubr.msk.bf16.vlgmr.msra.gmra.mrb[12].mxu1 %vm782_vm3, %v907_v29  ;;  %v2356_v29 = vld [vmem:[#allocation12 + $0x10] sm:$0xff]  }
 0x4f3   : > { %2146 = vmatpush3.bf16.msra.mxu1 %v1026_v30  ;;  %2147 = vmatprep.mubr.msk.bf16.mxu1 %vm2718_vm0, %v2717_v0 }
 0x4f4   : > { %2157 = vmatprep.subr.bf16.mxu1 %v2717_v0  ;;  %2216 = vmatpush3.bf16.msra.mxu0 %v2356_v29 }
 0x4f5   : > { %v2381_v31 = vpop.eup %2380  ;;  %2217 = vmatprep.subr.bf16.mxu0 %v2717_v0 }
 0x4f6   : > { %v1023_v32 = vmul.f32 %v2381_v31, %v3228_v54  ;;  %v2357_v31 = vld [vmem:[#allocation12 + $0x18] sm:$0xff]  }
 0x4f8   : > { %v1024_v33 = vpack.c.bf16 %v1023_v32, %v1023_v32  ;;  %2218 = vmatpush3.bf16.msra.mxu0 %v2357_v31 }
 0x4fa   : > { %2148 = vmatmul.mubr.msk.bf16.vlgmr.msra.gmra.mrb[16].mxu1 %vm782_vm3, %v1024_v33 }
 0x4fb   : > { %2158 = vmatpush3.bf16.msra.mxu1 %v1143_v34  ;;  %2159 = vmatprep.mubr.msk.bf16.mxu1 %vm2718_vm0, %v2717_v0 }
 0x4fc   : > { %2169 = vmatprep.subr.bf16.mxu1 %v2717_v0 }
 0x517   : > { %v1138_v35 = vpop.xlane.xlu0 %1137 }
 0x518   : > { %2382 = vrcp.f32 %v1138_v35 }
 0x51b   : > { %v1255_v39 = vpop.xlane.xlu0 %1254 }
 0x51c   : > { %2384 = vrcp.f32 %v1255_v39 }
 0x51f   : > { %v1372_v40 = vpop.xlane.xlu1 %1371  ;;  %v1489_v41 = vpop.xlane.xlu0 %1488 }
 0x520   : > { %2386 = vrcp.f32 %v1372_v40 }
 0x521   : > { %2388 = vrcp.f32 %v1489_v41 }
 0x522   : > { %v2383_v36 = vpop.eup %2382 }
 0x523   : > { %v1140_v37 = vmul.f32 %v2383_v36, %v2367_v7  ;;  %v1377_v48 = vpop.permute.xlu1 %1376 }
 0x525   : > { %v1141_v38 = vpack.c.bf16 %v1140_v37, %v1140_v37 }
 0x526   : > { %v2385_v42 = vpop.eup %2384 }
 0x527   : > { %2160 = vmatmul.mubr.msk.bf16.vlgmr.msra.gmra.mrb[20].mxu1 %vm782_vm3, %v1141_v38  ;;  %v1257_v44 = vmul.f32 %v2385_v42, %v3240_v9  ;;  %v1494_v52 = vpop.permute.xlu1 %1493 }
 0x528   : > { %2171 = vmatprep.mubr.msk.bf16.mxu1 %vm2718_vm0, %v2717_v0 }
 0x529   : > { %v1258_v46 = vpack.c.bf16 %v1257_v44, %v1257_v44 }
 0x52a   : > { %v2387_v47 = vpop.eup %2386 }
 0x52b   : > { %v1374_v49 = vmul.f32 %v2387_v47, %v3242_v10  ;;  %v2389_v51 = vpop.eup %2388  ;;  %v1611_v56 = vpop.permute.xlu1 %1610 }
 0x52c   : > { %v1491_v53 = vmul.f32 %v2389_v51, %v3246_v12 }
 0x52d   : > { %v1375_v50 = vpack.c.bf16 %v1374_v49, %v1374_v49 }
 0x52e   : > { %v1492_v54 = vpack.c.bf16 %v1491_v53, %v1491_v53 }
 0x537   : > { %v1606_v43 = vpop.xlane.xlu0 %1605 }
 0x538   : > { %2390 = vrcp.f32 %v1606_v43 }
 0x53b   : > { %v1260_v45 = vpop.permute.xlu0 %1259 }
 0x53c   : > { %2170 = vmatpush3.bf16.msra.mxu1 %v1260_v45 }
 0x53d   : > { %2181 = vmatprep.subr.bf16.mxu1 %v2717_v0 }
 0x53f   : > { %2172 = vmatmul.mubr.msk.bf16.vlgmr.msra.gmra.mrb[24].mxu1 %vm782_vm3, %v1258_v46 }
 0x540   : > { %2182 = vmatpush3.bf16.msra.mxu1 %v1377_v48  ;;  %2183 = vmatprep.mubr.msk.bf16.mxu1 %vm2718_vm0, %v2717_v0 }
 0x541   : > { %2193 = vmatprep.subr.bf16.mxu1 %v2717_v0 }
 0x542   : > { %v2391_v55 = vpop.eup %2390 }
 0x543   : > { %v1608_v57 = vmul.f32 %v2391_v55, %v3257_v20 }
 0x545   : > { %v1609_v58 = vpack.c.bf16 %v1608_v57, %v1608_v57 }
 0x547   : > { %2184 = vmatmul.mubr.msk.bf16.vlgmr.msra.gmra.mrb[28].mxu1 %vm782_vm3, %v1375_v50 }
 0x548   : > { %2194 = vmatpush3.bf16.msra.mxu1 %v1494_v52  ;;  %2195 = vmatprep.mubr.msk.bf16.mxu1 %vm2718_vm0, %v2717_v0 }
 0x549   : > { %2205 = vmatprep.subr.bf16.mxu1 %v2717_v0 }
 0x54f   : > { %2196 = vmatmul.mubr.msk.bf16.vlgmr.msra.gmra.mrb[32].mxu1 %vm782_vm3, %v1492_v54 }
 0x550   : > { %2206 = vmatpush3.bf16.msra.mxu1 %v1611_v56  ;;  %2207 = vmatprep.mubr.msk.bf16.mxu1 %vm2718_vm0, %v2717_v0 }
 0x557   : > { %2208 = vmatmul.mubr.msk.bf16.vlgmr.msra.gmra.mrb[36].mxu1 %vm782_vm3, %v1609_v58 }
 0x584   : > { %v836_v59 = vpop.f32.mrb[8].mxu1 }
 0x585   : > { %v842_v60 = vpack.c.bf16 %v836_v59, %v836_v59  ;;  %v2125_v61 = vpop.f32.mrb[9].mxu1 }
 0x586   : > { %v839_v62 = vpop.f32.mrb[10].mxu1 }
 0x587   : > { %844 = vst.msk [vmem:[#allocation2] sm:$0xf] %vm843_vm4, %v842_v60  ;;  %v2126_v63 = vpop.f32.mrb[11].mxu1 }
 0x5c5   : > { %v948_v1 = vpop.f32.mrb[12].mxu1 }
 0x5c6   : > { %v2037_v2 = vpack.c.bf16 %v948_v1, %v948_v1  ;;  %v2137_v4 = vpop.f32.mrb[13].mxu1 }
 0x5c7   : > { %v951_v5 = vpop.f32.mrb[14].mxu1 }
 0x5c8   : > { %958 = vrot.lane.b32.xlu1 %v2037_v2, %s2732_s15  ;;  %v2138_v6 = vpop.f32.mrb[15].mxu1 }
 0x5cd   : > { %v1065_v7 = vpop.f32.mrb[16].mxu1 }
 0x5ce   : > { %v2038_v8 = vpack.c.bf16 %v1065_v7, %v1065_v7  ;;  %v2149_v9 = vpop.f32.mrb[17].mxu1 }
 0x5cf   : > { %v1068_v10 = vpop.f32.mrb[18].mxu1 }
 0x5d0   : > { %1075 = vrot.lane.b32.xlu1 %v2038_v8, %s2731_s13  ;;  %v2150_v11 = vpop.f32.mrb[19].mxu1 }
 0x5fa   : > { %v1182_v12 = vpop.f32.mrb[20].mxu1 }
 0x5fb   : > { %v2039_v13 = vpack.c.bf16 %v1182_v12, %v1182_v12  ;;  %v2161_v14 = vpop.f32.mrb[21].mxu1 }
 0x5fc   : > { %v1185_v15 = vpop.f32.mrb[22].mxu1 }
 0x5fd   : > { %1192 = vrot.lane.b32.xlu0 %v2039_v13, %s2730_s21  ;;  %v2162_v16 = vpop.f32.mrb[23].mxu1 }
 0x612   : > { %v1299_v17 = vpop.f32.mrb[24].mxu1 }
 0x613   : > { %v2040_v18 = vpack.c.bf16 %v1299_v17, %v1299_v17  ;;  %v2173_v19 = vpop.f32.mrb[25].mxu1 }
 0x614   : > { %v1302_v20 = vpop.f32.mrb[26].mxu1 }
 0x615   : > { %1309 = vrot.lane.b32.xlu1 %v2040_v18, %s2733_s30  ;;  %v2174_v21 = vpop.f32.mrb[27].mxu1 }
 0x61a   : > { %v1416_v23 = vpop.f32.mrb[28].mxu1 }
 0x61b   : > { %v2041_v25 = vpack.c.bf16 %v1416_v23, %v1416_v23  ;;  %v2185_v26 = vpop.f32.mrb[29].mxu1 }
 0x61c   : > { %v1419_v27 = vpop.f32.mrb[30].mxu1 }
 0x61d   : > { %1426 = vrot.lane.b32.xlu0 %v2041_v25, %s2729_s14  ;;  %v2186_v28 = vpop.f32.mrb[31].mxu1 }
 0x622   : > { %v1533_v30 = vpop.f32.mrb[32].mxu1 }
 0x623   : > { %v2042_v32 = vpack.c.bf16 %v1533_v30, %v1533_v30  ;;  %v2197_v33 = vpop.f32.mrb[33].mxu1 }
 0x624   : > { %v1536_v34 = vpop.f32.mrb[34].mxu1 }
 0x625   : > { %1543 = vrot.lane.b32.xlu1 %v2042_v32, %s2728_s17  ;;  %v2198_v35 = vpop.f32.mrb[35].mxu1 }
 0x62a   : > { %v1650_v36 = vpop.f32.mrb[36].mxu1 }
 0x62b   : > { %v2043_v37 = vpack.c.bf16 %v1650_v36, %v1650_v36  ;;  %v2209_v38 = vpop.f32.mrb[37].mxu1 }
 0x62c   : > { %v1653_v39 = vpop.f32.mrb[38].mxu1 }
 0x62d   : > { %1660 = vrot.lane.b32.xlu0 %v2043_v37, %s2726_s16  ;;  %v2210_v40 = vpop.f32.mrb[39].mxu1  ;;  %s2598_s16 = sshll.u32 %s2734_s11, 4  ;;  %s2599_s16 = int_to_ptr.vmem [resolvable:$false] %s2598_s16 }
 0x62e   : > { %s2600_s25 = scalar_lea.vmem %s2599_s16, 256  ;;  %p2601_p8 = scmp.lt.s32.totalorder %s1782_s24, %s2599_s16 }
 0x62f   : > { %p2602_p5 = scmp.lt.s32.totalorder %s2600_s25, %s2594_s22 }
 0x631   : > { %p2603_p11 = por %p2602_p5, %p2601_p8 }
 0x633   : > { %p2604_p7 = pnand %p2603_p11, %p2597_p13 }
 0x63a   : > { %v959_v41 = vpop.permute.xlu1 %958 }
 0x63b   : > { %962 = vst.msk [vmem:[#allocation2] sm:$0xf] %vm961_vm5, %v959_v41 }
 0x642   : > { %v1076_v42 = vpop.permute.xlu1 %1075 }
 0x643   : > { %1079 = vst.msk [vmem:[#allocation2] sm:$0xf] %vm1078_vm6, %v1076_v42 }
 0x66f   : > { %v1193_v0 = vpop.permute.xlu0 %1192 }
 0x670   : > { %1196 = vst.msk [vmem:[#allocation2] sm:$0xf] %vm1195_vm7, %v1193_v0 }
 0x687   : > { %v1310_v43 = vpop.permute.xlu1 %1309 }
 0x688   : > { %1313 = vst.msk [vmem:[#allocation2] sm:$0xf] %vm1312_vm8, %v1310_v43 }
 0x68f   : > { %v1427_v44 = vpop.permute.xlu0 %1426 }
 0x690   : > { %1430 = vst.msk [vmem:[#allocation2] sm:$0xf] %vm1429_vm9, %v1427_v44 }
 0x697   : > { %v1544_v45 = vpop.permute.xlu1 %1543 }
 0x698   : > { %1547 = vst.msk [vmem:[#allocation2] sm:$0xf] %vm1546_vm10, %v1544_v45 }
 0x69f   : > { %v1661_v46 = vpop.permute.xlu0 %1660 }
 0x6a0   : > { %1664 = vst.msk [vmem:[#allocation2] sm:$0xf] %vm1663_vm11, %v1661_v46 }
 0x6a7   : > { %v1665_v47 = vld [vmem:[#allocation2] sm:$0xf] }
 0x6a8   : > { %2220 = vmatmul.mubr.msk.bf16.vlgmr.msra.gmra.mrb[32].mxu0 %vm545_vm1, %v1665_v47 }
 0x6a9   : > { %2607 = shalt.err (!%p2604_p7)
}
 0x6aa   : > { %s2608_s17 = scalar_lea.hbm %s3320_s19, 128  ;;  %s2612_s13 = scalar_lea.hbm %s3461_s1, 256 }
 0x6ab   : > { %p2609_p3 = scmp.ne.s32.totalorder %s3320_s19, %s2608_s17  ;;  %p2613_p12 = scmp.lt.u32.totalorder %s3320_s19, %s3461_s1 }
 0x6ac   : > { %p2614_p2 = scmp.lt.u32.totalorder %s2612_s13, %s2608_s17  ;;  %p2616_p4 = scmp.lt.u32.totalorder %s2608_s17, %s3320_s19 }
 0x6ad   : > { %p2610_p10 = pnand %p2609_p3, %p3462_p0 }
 0x6ae   : > { %p2615_p9 = por %p2614_p2, %p2613_p12 }
 0x6af   : > { %p2611_p6 = pneg %p2610_p10 }
 0x6b0   : > { %p2617_p1 = por %p2616_p4, %p2615_p9 }
 0x6b2   : > { %p2618_p13 = pnand %p2617_p1, %p2611_p6 }
 0x6b4   : > { %2621 = shalt.err (!%p2618_p13)
}
 0x6b5   : > { %2246 = dma.vmem_to_hbm [thread:$0]  (%p3462_p0), %s1782_s24, 128, %s3320_s19, %s1755_s10   ;;  %v2024_v3 = vld [vmem:[#allocation14] ss:$0 sm:$0xff] }
 0x6b6   : > { %s533_s12 = scalar_lea.vmem [#allocation15], %s3083_s27  ;;  %s3463_s11 = sld [smem:[#allocation33_spill]] }
 0x6b7   : > { %s1768_s8 = sshll.u32 %s533_s12, 4  ;;  %s1750_s27 = scalar_lea.sflag [#allocation5], %s3080_s28  ;;  %s3348_s8 = int_to_ptr.vmem [resolvable:$true] %s1768_s8 }
 0x6b8   : > { %s2622_s19 = scalar_lea.vmem %s3348_s8, 128  ;;  %s2735_s23 = smov [#allocation15]  }
 0x6b9   : > { %p2623_p8 = scmp.ne.s32.totalorder %s3348_s8, %s2622_s19  ;;  %s2626_s24 = sshll.u32 %s2735_s23, 4  ;;  %s2627_s24 = int_to_ptr.vmem [resolvable:$false] %s2626_s24 }
 0x6ba   : > { %p2629_p7 = scmp.lt.s32.totalorder %s3348_s8, %s2627_s24 }
 0x6bb   : > { %p2624_p5 = pnand %p2623_p8, %p3462_p0 }
 0x6bc   : > { %s3346_s16 = scalar_lea.hbm %s3463_s11, %s2032_s6  ;;  %s2628_s6 = scalar_lea.vmem %s2627_s24, 256 }
 0x6bd   : > { %p2625_p11 = pneg %p2624_p5  ;;  %p2630_p3 = scmp.lt.s32.totalorder %s2628_s6, %s2622_s19 }
 0x6bf   : > { %p2631_p10 = por %p2630_p3, %p2629_p7 }
 0x6c1   : > { %p2632_p6 = pnand %p2631_p10, %p2625_p11 }
 0x77b   : > { %v1742_v48 = vpop.f32.mrb[32].mxu0 }
 0x77c   : > { %v1743_v49 = vadd.f32 %v2024_v3, %v1742_v48  ;;  %v2221_v50 = vpop.f32.mrb[33].mxu0 }
 0x77d   : > { %v1745_v51 = vpop.f32.mrb[34].mxu0 }
 0x77e   : > { %v2222_v52 = vpop.f32.mrb[35].mxu0  ;;  %1748 = vst.msk [vmem:[%s533_s12] sm:$0xff] %vm545_vm1, %v1743_v49 }
 0x77f   : > { %2635 = shalt.err (!%p2632_p6)
}
 0x780   : > { %s2636_s28 = scalar_lea.hbm %s3346_s16, 128  ;;  %s2640_s17 = scalar_lea.hbm %s3463_s11, 256 }
 0x781   : > { %p2637_p12 = scmp.ne.s32.totalorder %s3346_s16, %s2636_s28  ;;  %p2641_p4 = scmp.lt.u32.totalorder %s3346_s16, %s3463_s11 }
 0x782   : > { %p2642_p1 = scmp.lt.u32.totalorder %s2640_s17, %s2636_s28  ;;  %p2644_p8 = scmp.lt.u32.totalorder %s2636_s28, %s3346_s16 }
 0x783   : > { %p2638_p2 = pnand %p2637_p12, %p3462_p0 }
 0x784   : > { %p2643_p13 = por %p2642_p1, %p2641_p4 }
 0x785   : > { %p2639_p9 = pneg %p2638_p2 }
 0x786   : > { %p2645_p5 = por %p2644_p8, %p2643_p13 }
 0x788   : > { %p2646_p11 = pnand %p2645_p5, %p2639_p9 }
 0x78a   : > { %2649 = shalt.err (!%p2646_p11)
}
 0x78b   : > { %2245 = dma.vmem_to_hbm [thread:$0]  (%p3462_p0), %s3348_s8, 128, %s3346_s16, %s1750_s27  }
 0x78c PF: > { %s3464_s13 = sld [smem:[#allocation24_spill]]  ;;  %s3465_s15 = sld [smem:[#allocation29_spill]] }
 0x78d   : > { %p3467_p3 = scmp.ge.s32.totalorder %s2704_s20, 2 }
 0x792   : > { %s1793_s30 = sand.u32 1, %s3464_s13   ;;  %p3466_p7 = scmp.ne.s32.totalorder %s3465_s15, 0 }
 0x793   : > { %s1794_s12 = scalar_lea.sflag [#allocation5], %s1793_s30 }
 0x794   : > { %p2273_p10 = pnand %p3467_p3, %p3466_p7 }
 0x796   : > { %2683 = dma.done.wait (!%p2273_p10), %s1794_s12, 128  }
 0x797   : > { %2685 = vsyncadd (!%p2273_p10), %s1794_s12, 4294967168  ;;  %s1803_s29 = scalar_lea.sflag [#allocation17], %s1793_s30 }
 0x798   : > { %2687 = dma.done.wait (!%p2273_p10), %s1803_s29, 128  }
 0x799   : > { %2689 = vsyncadd (!%p2273_p10), %s1803_s29, 4294967168  ;;  %s3468_s20 = sld [smem:[#allocation26_spill]]  ;;  %s3469_s26 = sld [smem:[#allocation25_spill]] }
 0x79a   : > { %s3470_s19 = sld [smem:[#allocation27_spill]]  ;;  %s3471_s17 = smov %s2696_s18 }
 0x79f   : > { %p33_p0 = scmp.ge.s32.totalorder %s3468_s20, 4   ;;  %s3472_s18 = smov %s3469_s26 }
 0x7a1   :  { %35 = sbr.rel (!%p33_p0) target bundleno = 17 (0x11), region = 162 }
 0x7a8   :  { %1808 = vsyncpa [#allocation4], 1 }
 0x7a9   :  { %1810 = vsyncpa [#allocation4 + $0x1], 1 }
 0x7aa   :  { %1811 = vsyncpa [#allocation7], 1 }
 0x7ab   :  { %1813 = vsyncpa [#allocation7 + $0x1], 1 }
 0x7ac   :  { %1814 = vsyncpa [#allocation10], 1 }
 0x7ad   :  { %1815 = vsyncpa [#allocation13], 1 }
 0x7ae   :  { %1816 = vsyncpa [#allocation5], 1 }
 0x7af   :  { %1818 = vsyncpa [#allocation5 + $0x1], 1 }
 0x7b0   :  { %1819 = vsyncpa [#allocation17], 1 }
 0x7b1   :  { %1821 = vsyncpa [#allocation17 + $0x1], 1 }

</bundles_post_ra>
